<compile_context>
chip_gen: v7x
topology: tpu7x:2x2x1
jax: 0.10.0
libtpu: 0.0.40
codegen_flags: <defaults>
</compile_context>

<pallas_src>
import jax
import jax.numpy as jnp
from jax.experimental import pallas as pl
from jax.experimental.pallas import tpu as pltpu


# ----------------------------------------------------------------------------
# Kernel body
# ----------------------------------------------------------------------------
def _kron_ones_kernel(x_ref, e_ref, o_ref):
    """x_ref: (TR, W); e_ref: (W, W*KW); o_ref: (TR, KH*KW*W)."""
    wkw = e_ref.shape[1]                 # W * KW (static)
    kh = o_ref.shape[1] // wkw           # KH (static)

    x = x_ref[...]
    if x.dtype != e_ref.dtype:           # trace-time branch (int / bf16 inputs)
        x = x.astype(e_ref.dtype)

    # Column interleave: y[t, j*KW + q] = x[t, j].  HIGHEST precision keeps
    # the 1.0 * x products exact for f32 inputs (no silent bf16 demotion).
    y = jnp.dot(
        x,
        e_ref[...],
        precision=jax.lax.Precision.HIGHEST,
        preferred_element_type=jnp.float32,
    ).astype(o_ref.dtype)

    # Row (KH) replication is pure data movement: KH contiguous lane-slice
    # stores of the interleaved row.  When W*KW is a multiple of 128 these are
    # full-width unmasked vst; otherwise at most one partial vreg per slice.
    for p in range(kh):
        o_ref[:, p * wkw:(p + 1) * wkw] = y


# ----------------------------------------------------------------------------
# Host-side helpers
# ----------------------------------------------------------------------------
def _normalize_kernel(kernel):
    """Match torch.ones(kernel) -> left-padded kron factor (KH, KW)."""
    if isinstance(kernel, int):
        return 1, int(kernel)
    kernel = tuple(int(k) for k in kernel)
    if len(kernel) == 1:
        return 1, kernel[0]
    if len(kernel) == 2:
        return kernel
    raise NotImplementedError("Enlarger kernels of rank > 2 are not supported")


def _vmem_budget_bytes():
    """~75% of per-core VMEM: ~96 MiB on v5e/v6e (128 MiB), ~48 MiB on v7x (64 MiB)."""
    cap = None
    try:
        cap = getattr(pltpu.get_tpu_info(), "vmem_capacity_bytes", None)
    except Exception:
        cap = None
    if not cap:
        cap = 64 * 1024 * 1024           # conservative (v7x-sized) default
    return int(cap) * 3 // 4


def enlarge(x, kernel=(2, 2), *, force_pallas=False):
    """Pallas equivalent of Enlarger(kernel).forward(x) for 4-D NCHW x."""
    KH, KW = _normalize_kernel(kernel)
    B, C, H, W = x.shape
    out_dtype = jnp.result_type(x.dtype, jnp.float32)   # torch.ones is f32

    R = B * C * H                        # flattened rows of the spatial problem
    WKW = W * KW                         # one KW-interleaved row
    WO = KH * WKW                        # one fully expanded (pseudo-)row
    osize = jnp.dtype(out_dtype).itemsize
    xsize = jnp.dtype(x.dtype).itemsize
    out_bytes = R * WO * osize
    e_bytes = W * WKW * osize

    # ---- XLA fallback: tiny problems / sub-128-lane rows / oversized E_col --
    small = out_bytes < 256 * 1024       # launch + pipeline-prime overhead wins
    skinny = WO < 128                    # sub-128 output lanes -> masked stores
    e_too_big = e_bytes > 8 * 1024 * 1024
    if e_too_big or ((small or skinny) and not force_pallas):
        x_p = x.astype(out_dtype)
        return jnp.repeat(jnp.repeat(x_p, KH, axis=2), KW, axis=3)

    # ---- Constant interleave matrix (built ONCE outside the kernel) ---------
    # E_col[j, j*KW + q] = 1, so  (x @ E_col)[t, j*KW + q] = x[t, j].
    e_col = jnp.repeat(jnp.eye(W, dtype=out_dtype), KW, axis=1)   # (W, W*KW)

    x2 = x.reshape(R, W)                 # free leading-dim reshape

    # ---- Tile sizing ---------------------------------------------------------
    vmem_limit = _vmem_budget_bytes()
    # Budget: 2x input block + 2x output block + ~2x interleaved row temporary
    # (f32) per row, plus the (double-buffered) E_col, within ~70% of the limit.
    per_row = 2 * W * xsize + 2 * WO * osize + 2 * WKW * 4
    tr_vmem = (int(vmem_limit * 0.7) - 2 * e_bytes) // per_row
    tr_out = (8 * 1024 * 1024) // (WO * osize)       # <= ~8 MiB output blocks
    tr = min(tr_vmem, tr_out)
    # Prefer >= ~16 grid steps (pipelining / v7x megacore) but never shrink the
    # output block below ~512 KiB (per-step overhead would dominate).
    tr_steps = pl.cdiv(R, 16)
    tr_floor = max(8, (512 * 1024) // (WO * osize))
    tr = min(tr, max(tr_steps, tr_floor))
    tr = max(tr, 8)
    if tr >= R:
        tr = R                           # full extent is always legal
    else:
        tr = (tr // 32) * 32             # sublane-safe for f32/bf16/int8 inputs
        if tr < 32:
            tr = min(R, 32)
    TR = tr
    grid = (pl.cdiv(R, TR),)

    out2 = pl.pallas_call(
        _kron_ones_kernel,
        out_shape=jax.ShapeDtypeStruct((R, WO), out_dtype),
        grid=grid,
        in_specs=[
            pl.BlockSpec((TR, W), lambda i: (i, 0)),       # row tile of x
            pl.BlockSpec((W, WKW), lambda i: (0, 0)),      # E_col: constant index
        ],
        out_specs=pl.BlockSpec((TR, WO), lambda i: (i, 0)),
        compiler_params=pltpu.CompilerParams(
            dimension_semantics=("parallel",),             # megacore-shardable
            vmem_limit_bytes=int(vmem_limit),
        ),
    )(x2, e_col)

    # Pure reshape: (R, KH*KW*W) row-major is exactly (B, C, H*KH, W*KW).
    return out2.reshape(B, C, H * KH, W * KW)


# ----------------------------------------------------------------------------
# Self-test
# ----------------------------------------------------------------------------
if __name__ == "__main__":
    key = jax.random.PRNGKey(0)
    k1, k2 = jax.random.split(key)

    # 1) Small input (the module's typical toy shape): routed to the XLA
    #    fallback (output < 256 KiB and KH*KW*W = 64 < 128 lanes).
    x_small = jax.random.normal(k1, (2, 4, 16, 16), dtype=jnp.float32)
    out_small = jax.block_until_ready(enlarge(x_small, (2, 2)))
    ref_small = jnp.repeat(jnp.repeat(x_small, 2, axis=2), 2, axis=3)
    assert out_small.shape == (2, 4, 32, 32), out_small.shape
    assert out_small.dtype == jnp.float32
    assert jnp.array_equal(out_small, ref_small), "fallback path mismatch"

    # 2) Larger input: exercises the Pallas kernel (multiple grid steps).
    x_big = jax.random.normal(k2, (2, 8, 128, 64), dtype=jnp.float32)
    out_big = jax.block_until_ready(enlarge(x_big, (2, 2)))
    ref_big = jnp.repeat(jnp.repeat(x_big, 2, axis=2), 2, axis=3)
    assert out_big.shape == (2, 8, 256, 128), out_big.shape
    assert out_big.dtype == jnp.float32
    assert jnp.allclose(out_big, ref_big, rtol=1e-6, atol=0.0), "pallas 2x2 mismatch"

    # 3) Non-square kernel through the Pallas path as well (KH=3, KW=2).
    out_32 = jax.block_until_ready(enlarge(x_big, (3, 2)))
    ref_32 = jnp.repeat(jnp.repeat(x_big, 3, axis=2), 2, axis=3)
    assert out_32.shape == (2, 8, 384, 128), out_32.shape
    assert jnp.allclose(out_32, ref_32, rtol=1e-6, atol=0.0), "pallas 3x2 mismatch"

    print("KERNEL_OK")
</pallas_src>

<mosaic_0001>
module attributes {stable_mosaic.version = 11 : i64} {
  func.func @_kron_ones_kernel(%arg0: i32, %arg1: memref<512x64xf32, #tpu.memory_space<vmem>>, %arg2: memref<64x128xf32, #tpu.memory_space<vmem>>, %arg3: memref<512x256xf32, #tpu.memory_space<vmem>>) attributes {dimension_semantics = [#tpu.dimension_semantics<parallel>], iteration_bounds = array<i64: 4>, scalar_prefetch = 0 : i64, scratch_operands = 0 : i64, tpu.core_type = #tpu.core_type<tc>, window_params = [{transform_indices = @transform_0, window_bounds = array<i64: 512, 64>}, {pipeline_mode = #tpu.pipeline_mode<synchronous>, transform_indices = @transform_1, window_bounds = array<i64: 64, 128>}, {transform_indices = @transform_2, window_bounds = array<i64: 512, 256>}]} {
    %c0 = arith.constant 0 : index
    %c0_0 = arith.constant 0 : index
    %0 = vector.load %arg1[%c0, %c0_0] : memref<512x64xf32, #tpu.memory_space<vmem>>, vector<512x64xf32>
    %c0_1 = arith.constant 0 : index
    %c0_2 = arith.constant 0 : index
    %1 = vector.load %arg2[%c0_1, %c0_2] : memref<64x128xf32, #tpu.memory_space<vmem>>, vector<64x128xf32>
    %cst = arith.constant dense<0.000000e+00> : vector<512x128xf32>
    %2 = tpu.matmul %0, %1, %cst {dimension_numbers = #tpu.dot_dimension_numbers<[1], [0], [0], [1], [0, 0, 1, 1], [], []>, precision = #tpu.contract_precision<fp32>} : vector<512x64xf32>, vector<64x128xf32>, vector<512x128xf32> -> vector<512x128xf32>
    %c0_3 = arith.constant 0 : index
    %c0_4 = arith.constant 0 : index
    %3 = vector.load %arg3[%c0_3, %c0_4] : memref<512x256xf32, #tpu.memory_space<vmem>>, vector<512x128xf32>
    tpu.vector_store %arg3[%c0_3, %c0_4], %2 {strides = array<i32>} : memref<512x256xf32, #tpu.memory_space<vmem>>, vector<512x128xf32>,
    %c0_5 = arith.constant 0 : index
    %c128 = arith.constant 128 : index
    %4 = vector.load %arg3[%c0_5, %c128] : memref<512x256xf32, #tpu.memory_space<vmem>>, vector<512x128xf32>
    tpu.vector_store %arg3[%c0_5, %c128], %2 {strides = array<i32>} : memref<512x256xf32, #tpu.memory_space<vmem>>, vector<512x128xf32>,
    return
  }
  func.func @transform_0(%arg0: i32) -> (i32, i32) {
    %c0_i32 = arith.constant 0 : i32
    %c0_i32_0 = arith.constant 0 : i32
    return %arg0, %c0_i32 : i32, i32
  }
  func.func @transform_1(%arg0: i32) -> (i32, i32) {
    %c0_i32 = arith.constant 0 : i32
    %c0_i32_0 = arith.constant 0 : i32
    %c0_i32_1 = arith.constant 0 : i32
    return %c0_i32, %c0_i32_0 : i32, i32
  }
  func.func @transform_2(%arg0: i32) -> (i32, i32) {
    %c0_i32 = arith.constant 0 : i32
    %c0_i32_0 = arith.constant 0 : i32
    return %arg0, %c0_i32 : i32, i32
  }
}

</mosaic_0001>

<bundles_post_ra>
// kernel: tpu_custom_call.1
= control target key start
LH: loop header
LB: loop body
LE: loop exit
PB: predicated region body
PF: predicated region fallthrough
CT: control target
= control target key end

     0   :  { %7 = vsyncpa [#allocation3], 0  ;;  %s6922_s0 = inlined_call_operand.vmem [shape: f32[2048,64], index: 0, kind: input, shape index: {}]   ;;  %s6923_s1 = inlined_call_operand.hbm [shape: f32[64,128], index: 1, kind: input, shape index: {}]   ;;  %s6924_s2 = inlined_call_operand.hbm [shape: f32[2048,256], index: 2, kind: output, shape index: {}]  }
   0x1   :  { %8 = vsyncpa [#allocation4], 0 }
   0x2   :  { %10 = vsyncpa [#allocation4 + $0x1], 0  ;;  %s5596_s9 = smov 0   ;;  %s5598_s10 = smov 0  }
   0x3   :  { %s5600_s11 = smov 0   ;;  %s5602_s12 = smov 0  }
   0x4 LB: > { %s5617_s13 = sadd.s32 4294967295, %s5573_s12   ;;  %s3888_s14 = sadd.s32 4294967294, %s5573_s12   ;;  %s5573_s12 = sphi %s5602_s12, %s7340_s12   ;;  %s5569_s11 = sphi %s5600_s11, %s7339_s11   ;;  %s5565_s10 = sphi %s5598_s10, %s7338_s10   ;;  %s5561_s9 = sphi %s5596_s9, %s7337_s9  }
   0x5   : > { %s5621_s15 = sadd.s32 1, %s5573_s12   ;;  %s70_s16 = sadd.s32 1, %s5569_s11 }
   0x6   : > { %s67_s17 = ssub.s32 %s5573_s12, %s5621_s15  ;;  %p80_p0 = scmp.ne.s32.totalorder %s5569_s11, %s5565_s10 }
   0x7   : > { %p68_p1 = scmp.eq.s32.totalorder %s67_s17, 0  ;;  %p81_p2 = scmp.eq.s32.totalorder %s5617_s13, 3 }
   0x8   : > { %p86_p3 = scmp.ne.s32.totalorder %s5565_s10, %s5561_s9  ;;  %p87_p4 = scmp.eq.s32.totalorder %s3888_s14, 3 }
   0x9   : > { %s5632_s18 = scalar_select %p68_p1, %s5569_s11, %s70_s16  }
   0xa   : > { %p5634_p5 = por %p81_p2, %p80_p0  ;;  %p5638_p6 = por %p87_p4, %p86_p3 }
   0xb   : > { %p3889_p7 = scmp.ge.s32.totalorder %s5573_s12, 1  ;;  %p94_p8 = scmp.lt.s32.totalorder %s5573_s12, 5 }
   0xc   : > { %s7078_s19 = scalar_select %p5634_p5, 1, 0 }
   0xd   : > { %s7079_s20 = scalar_select %p5638_p6, 1, 0 }
   0xe   : > { %p6925_p9 = scmp.eq.s32.totalorder %s5617_s13, 0  ;;  %p5645_p10 = pnand %p3889_p7, %p94_p8 }
   0xf   : > { %s5575_s22 = smov [#allocation2]   ;;  %s5479_s27 = scalar_lea.hbm %s6923_s1, 1024 }
  0x10   : > { %s7080_s21 = scalar_select %p5645_p10, 1, 0 }
  0x11   : > { %s106_s23 = sshll.u32 %s5575_s22, 4  ;;  %p5431_p11 = pneg %p5645_p10  ;;  %s107_s23 = int_to_ptr.vmem [resolvable:$true] %s106_s23 }
  0x12   : > { %p5480_p13 = scmp.ne.s32.totalorder %s6923_s1, %s5479_s27  ;;  %p5486_p3 = scmp.lt.u32.totalorder %s5479_s27, %s6923_s1 }
  0x13   : > { %p5653_p12 = pnand %p6925_p9, %p5431_p11 }
  0x15   : > { %p5481_p0 = pneg %p5653_p12 }
  0x17   : > { %p5482_p1 = pnand %p5481_p0, %p5480_p13 }
  0x19   : > { %p5483_p2 = pneg %p5482_p1 }
  0x1b   : > { %p5488_p4 = pnand %p5486_p3, %p5483_p2 }
  0x1d   : > { %5491 = shalt.err (!%p5488_p4)
}
  0x1e   : > { %s5492_s4 = scalar_lea.vmem %s107_s23, 1024  ;;  %p5500_p9 = scmp.lt.s32.totalorder %s107_s23, %s107_s23 }
  0x1f   : > { %p5493_p7 = scmp.ne.s32.totalorder %s107_s23, %s5492_s4  ;;  %p5501_p6 = scmp.lt.s32.totalorder %s5492_s4, %s5492_s4 }
  0x21   : > { %p5495_p8 = pnand %p5493_p7, %p5481_p0  ;;  %p5502_p5 = por %p5501_p6, %p5500_p9 }
  0x23   : > { %p5496_p11 = pneg %p5495_p8 }
  0x25   : > { %p5503_p10 = pnand %p5502_p5, %p5496_p11 }
  0x27   : > { %5506 = shalt.err (!%p5503_p10)
}
  0x28   : > { %s5576_s5 = smov 128   ;;  %s5577_s6 = smov 8  }
  0x29   : > { %5434 = dma.hbm_to_vmem [thread:$0]  (!%p5653_p12), %s6923_s1, 1024, %s107_s23, [#allocation3], %s5576_s5, %s5576_s5, %s5577_s6  }
  0x2a   : > { %p7082_p13 = scmp.ne.s32.totalorder %s7080_s21, 0 }
  0x2c   : > { %131 = sbr.rel (%p7082_p13) target bundleno = 687 (0x2af), region = 28 }
  0x33   : > { %p7083_p1 = scmp.eq.s32.totalorder %s5617_s13, 0 }
  0x35   : > { %5552 = dma.done.wait (%p7083_p1), [#allocation3], 1024   ;;  %p7084_p0 = pmov %p7083_p1 }
  0x36   : > { %s3895_s14 = sshll.u32 %s5617_s13, 6  ;;  %v224_v0 = vld [vmem:[#allocation2] sm:$0xff]  ;;  %v225_v1 = vld [vmem:[#allocation2 + $0x8] sm:$0xff]  ;;  %v5685_v2 = vld [vmem:[#allocation2 + $0x10] sm:$0xff]  ;;  %vm232_vm0 = vcmask 523264   ;;  %s150_s21 = sand.u32 1, %s5565_s10  }
  0x37   : > { %5554 = vsyncadd (%p7084_p0), [#allocation3], 4294966272  ;;  %p154_p5 = scmp.lt.s32.totalorder %s3895_s14, 255  ;;  %v426_v3 = vand.u32 4294901760, %v224_v0  ;;  %v429_v4 = vand.u32 4294901760, %v225_v1  ;;  %v5687_v5 = vld [vmem:[#allocation2 + $0x18] sm:$0xff] }
  0x38   : > { %v432_v6 = vand.u32 4294901760, %v5685_v2  ;;  %v5690_v7 = vld [vmem:[#allocation2 + $0x20] sm:$0xff]  ;;  %v5692_v8 = vld [vmem:[#allocation2 + $0x28] sm:$0xff]  ;;  %v6932_v9 = vand.u32 4294901760, %v5687_v5  ;;  %v5697_v12 = vld [vmem:[#allocation2 + $0x30] sm:$0xff]  ;;  %s3894_s23 = sshll.u32 %s150_s21, 10 }
  0x39   : > { %s7342_s14 = smov (!%p154_p5, %s3895_s14), 255  ;;  %v6931_v10 = vand.u32 4294901760, %v5690_v7  ;;  %v6930_v11 = vand.u32 4294901760, %v5692_v8  ;;  %v5699_v13 = vld [vmem:[#allocation2 + $0x38] sm:$0xff]  ;;  %v5702_v15 = vpack.c.bf16 %v429_v4, %v426_v3  ;;  %v6929_v16 = vand.u32 4294901760, %v5697_v12  ;;  %s6740_s25 = scalar_lea.vmem [#allocation5], %s3894_s23 }
  0x3a   : > { %s3896_s16 = sshll.u32 %s7342_s14, 3  ;;  %v5713_v21 = vpack.c.bf16 %v6932_v9, %v432_v6  ;;  %v6928_v22 = vand.u32 4294901760, %v5699_v13  ;;  %v5730_v28 = vsub.f32 %v224_v0, %v426_v3  ;;  %v5732_v29 = vsub.f32 %v225_v1, %v429_v4  ;;  %s3904_s26 = sshll.u32 %s5617_s13, 14 }
  0x3b   : > { %s5683_s24 = scalar_lea.vmem %s6922_s0, %s3896_s16  ;;  %5010 = vmatprep.subr.bf16.mxu1 %v5702_v15  ;;  %5058 = vmatprep.subr.bf16.mxu0 %v5702_v15  ;;  %v5726_v26 = vpack.c.bf16 %v6930_v11, %v6931_v10  ;;  %s3814_s27 = sshll.u32 %s6740_s25, 4  ;;  %s6873_s27 = int_to_ptr.vmem [resolvable:$true] %s3814_s27 }
  0x3c   : > { %v160_v14 = vld [vmem:[%s5683_s24] sm:$0xff]  ;;  %v161_v18 = vld [vmem:[%s5683_s24 + $0x8] sm:$0xff]  ;;  %v162_v19 = vld [vmem:[%s5683_s24 + $0x10] sm:$0xff]  ;;  %5012 = vmatpush3.bf16.msra.mxu1 %v5702_v15  ;;  %5060 = vmatpush3.bf16.msra.mxu0 %v5702_v15  ;;  %v1141_v36 = vand.u32 4294901760, %v5730_v28  ;;  %v1148_v37 = vand.u32 4294901760, %v5732_v29  ;;  %v5762_v43 = vpack.c.bf16 %v6928_v22, %v6929_v16  ;;  %s6871_s30 = scalar_lea.hbm %s6924_s2, %s3904_s26  ;;  %s6881_s13 = scalar_lea.sflag [#allocation4], %s150_s21 }
  0x3d   : > { %v234_v17 = vsel %vm232_vm0, %v160_v14, 0  ;;  %v163_v20 = vld [vmem:[%s5683_s24 + $0x18] sm:$0xff]  ;;  %v237_v24 = vsel %vm232_vm0, %v161_v18, 0  ;;  %v164_v25 = vld [vmem:[%s5683_s24 + $0x20] sm:$0xff]  ;;  %v165_v30 = vld [vmem:[%s5683_s24 + $0x28] sm:$0xff]  ;;  %v240_v32 = vsel %vm232_vm0, %v162_v19, 0  ;;  %5014 = vmatprep.subr.bf16.mxu1 %v5713_v21  ;;  %5062 = vmatprep.subr.bf16.mxu0 %v5713_v21 }
  0x3e   : > { %v5716_v23 = vand.u32 4294901760, %v234_v17  ;;  %v5728_v27 = vand.u32 4294901760, %v237_v24  ;;  %v243_v33 = vsel %vm232_vm0, %v163_v20, 0  ;;  %v246_v34 = vsel %vm232_vm0, %v164_v25, 0  ;;  %v166_v51 = vld [vmem:[%s5683_s24 + $0x30] sm:$0xff]  ;;  %v167_v60 = vld [vmem:[%s5683_s24 + $0x38] sm:$0xff] }
  0x3f   : > { %v5750_v38 = vand.u32 4294901760, %v240_v32  ;;  %v5753_v40 = vand.u32 4294901760, %v243_v33  ;;  %v5755_v41 = vand.u32 4294901760, %v246_v34  ;;  %v249_v42 = vsel %vm232_vm0, %v165_v30, 0  ;;  %v168_v61 = vld [vmem:[%s5683_s24 + $0x40] sm:$0xff]  ;;  %v169_v62 = vld [vmem:[%s5683_s24 + $0x48] sm:$0xff] }
  0x40   : > { %v5738_v31 = vsub.f32 %v234_v17, %v5716_v23  ;;  %v5746_v35 = vsub.f32 %v237_v24, %v5728_v27  ;;  %v1142_v45 = vsub.f32 %v5730_v28, %v1141_v36  ;;  %v1149_v46 = vsub.f32 %v5732_v29, %v1148_v37  ;;  %5016 = vmatpush3.bf16.msra.mxu1 %v5713_v21  ;;  %v170_v24 = vld [vmem:[%s5683_s24 + $0x50] sm:$0xff]  ;;  %v171_v25 = vld [vmem:[%s5683_s24 + $0x58] sm:$0xff]  ;;  %v176_v11 = vld [vmem:[%s5683_s24 + $0x80] sm:$0xff]  ;;  %s5507_s3 = scalar_lea.vmem %s6873_s27, 16384  ;;  %p7335_p9 = scmp.ne.s32.totalorder %s7078_s19, 0 }
  0x41   : > { %5064 = vmatpush3.bf16.msra.mxu0 %v5713_v21  ;;  %v5771_v48 = vsub.f32 %v240_v32, %v5750_v38  ;;  %v5774_v49 = vsub.f32 %v243_v33, %v5753_v40  ;;  %v5776_v50 = vand.u32 4294901760, %v249_v42  ;;  %5018 = vmatprep.subr.bf16.mxu1 %v5726_v26  ;;  %v5785_v55 = vsub.f32 %v246_v34, %v5755_v41  ;;  %v175_v16 = vld [vmem:[%s5683_s24 + $0x78] sm:$0xff]  ;;  %p5508_p6 = scmp.ne.s32.totalorder %s6873_s27, %s5507_s3  ;;  %s5578_s4 = smov [#allocation5]  }
  0x42   : > { %7085 = vst [vmem:[#allocation8_spill] sm:$0xff] %v5738_v31  ;;  %7086 = vst [vmem:[#allocation9_spill] sm:$0xff] %v5746_v35  ;;  %v500_v39 = vand.u32 4294901760, %v5738_v31  ;;  %v510_v44 = vand.u32 4294901760, %v5746_v35  ;;  %5066 = vmatprep.subr.bf16.mxu0 %v5726_v26  ;;  %v1143_v53 = vand.u32 4294901760, %v1142_v45  ;;  %v1150_v54 = vand.u32 4294901760, %v1149_v46 }
  0x43   : > { %7087 = vst [vmem:[#allocation10_spill] sm:$0xff] %v5771_v48  ;;  %7088 = vst [vmem:[#allocation11_spill] sm:$0xff] %v5774_v49  ;;  %v520_v57 = vand.u32 4294901760, %v5771_v48  ;;  %v530_v58 = vand.u32 4294901760, %v5774_v49  ;;  %v5790_v59 = vsub.f32 %v249_v42, %v5776_v50  ;;  %v540_v63 = vand.u32 4294901760, %v5785_v55  ;;  %v172_v45 = vld [vmem:[%s5683_s24 + $0x60] sm:$0xff]  ;;  %p5509_p10 = pnand %p5508_p6, %p7335_p9 }
  0x44   : > { %v501_v47 = vsub.f32 %v5738_v31, %v500_v39  ;;  %v511_v52 = vsub.f32 %v5746_v35, %v510_v44  ;;  %7089 = vst [vmem:[#allocation12_spill] sm:$0xff] %v5785_v55  ;;  %4689 = vmatprep.mubr.f32.mxu0 %v500_v39  ;;  %v252_v0 = vsel %vm232_vm0, %v166_v51, 0  ;;  %5020 = vmatpush3.bf16.msra.mxu1 %v5726_v26  ;;  %v255_v18 = vsel %vm232_vm0, %v167_v60, 0  ;;  %v173_v46 = vld [vmem:[%s5683_s24 + $0x68] sm:$0xff]  ;;  %s5511_s5 = sshll.u32 %s5578_s4, 4  ;;  %s5512_s5 = int_to_ptr.vmem [resolvable:$false] %s5511_s5 }
  0x45   : > { %7090 = vst [vmem:[#allocation13_spill] sm:$0xff] %v5790_v59  ;;  %5068 = vmatpush3.bf16.msra.mxu0 %v5726_v26  ;;  %v5073_v1 = vpack.c.bf16 %v1148_v37, %v1141_v36  ;;  %v521_v3 = vsub.f32 %v5771_v48, %v520_v57  ;;  %v531_v4 = vsub.f32 %v5774_v49, %v530_v58  ;;  %v5803_v14 = vand.u32 4294901760, %v252_v0  ;;  %v183_v48 = vld [vmem:[%s5683_s24 + $0xb8] sm:$0xff]  ;;  %p5510_p12 = pneg %p5509_p10  ;;  %s5513_s6 = scalar_lea.vmem %s5512_s5, 32768 }
  0x46   : > { %v502_v56 = vand.u32 4294901760, %v501_v47  ;;  %5022 = vmatprep.subr.bf16.mxu1 %v5762_v43  ;;  %5070 = vmatprep.subr.bf16.mxu0 %v5762_v43  ;;  %v5025_v17 = vpack.c.bf16 %v1150_v54, %v1143_v53  ;;  %v258_v19 = vsel %vm232_vm0, %v168_v61, 0  ;;  %v261_v20 = vsel %vm232_vm0, %v169_v62, 0  ;;  %p5514_p2 = scmp.lt.s32.totalorder %s6873_s27, %s5512_s5  ;;  %p5515_p3 = scmp.lt.s32.totalorder %s5513_s6, %s5507_s3 }
  0x47   : > { %v512_v30 = vand.u32 4294901760, %v511_v52  ;;  %v541_v32 = vsub.f32 %v5785_v55, %v540_v63  ;;  %v550_v33 = vand.u32 4294901760, %v5790_v59  ;;  %v5817_v34 = vsub.f32 %v252_v0, %v5803_v14  ;;  %v181_v55 = vld [vmem:[%s5683_s24 + $0xa8] sm:$0xff] }
  0x48   : > { %4353 = vmatprep.mubr.f32.mxu1 %v502_v56  ;;  %v522_v36 = vand.u32 4294901760, %v521_v3  ;;  %v5819_v37 = vand.u32 4294901760, %v255_v18  ;;  %v5821_v39 = vand.u32 4294901760, %v258_v19  ;;  %v5823_v42 = vand.u32 4294901760, %v261_v20  ;;  %5024 = vmatpush3.bf16.msra.mxu1 %v5762_v43  ;;  %p5516_p4 = por %p5515_p3, %p5514_p2 }
  0x49   : > { %7091 = vst [vmem:[#allocation14_spill] sm:$0xff] %v5817_v34  ;;  %5072 = vmatpush3.bf16.msra.mxu0 %v5762_v43  ;;  %v532_v47 = vand.u32 4294901760, %v531_v4  ;;  %v560_v51 = vand.u32 4294901760, %v5817_v34  ;;  %v264_v52 = vsel %vm232_vm0, %v170_v24, 0  ;;  %v267_v53 = vsel %vm232_vm0, %v171_v25, 0  ;;  %5026 = vmatprep.subr.bf16.mxu1 %v5025_v17  ;;  %v174_v25 = vld [vmem:[%s5683_s24 + $0x70] sm:$0xff] }
  0x4a   : > { %5074 = vmatprep.subr.bf16.mxu0 %v5073_v1  ;;  %v5833_v54 = vsub.f32 %v255_v18, %v5819_v37  ;;  %v5836_v56 = vsub.f32 %v258_v19, %v5821_v39  ;;  %v5839_v60 = vsub.f32 %v261_v20, %v5823_v42  ;;  %v5841_v61 = vand.u32 4294901760, %v264_v52  ;;  %p5517_p7 = pnand %p5516_p4, %p5510_p12 }
  0x4b   : > { %v551_v62 = vsub.f32 %v5790_v59, %v550_v33  ;;  %v5846_v0 = vand.u32 4294901760, %v267_v53  ;;  %v270_v3 = vsel %vm232_vm0, %v172_v45, 0  ;;  %v273_v4 = vsel %vm232_vm0, %v173_v46, 0  ;;  %4354 = vmatmul.mubr.f32.vlgmr.msra.gmra.mrb[0].mxu1 %v512_v30 }
  0x4c   : > { %7092 = vst [vmem:[#allocation15_spill] sm:$0xff] %v5833_v54  ;;  %7093 = vst [vmem:[#allocation16_spill] sm:$0xff] %v5836_v56  ;;  %4690 = vmatmul.mubr.f32.vlgmr.msra.gmra.mrb[0].mxu0 %v510_v44  ;;  %v542_v18 = vand.u32 4294901760, %v541_v32  ;;  %v561_v19 = vsub.f32 %v5817_v34, %v560_v51  ;;  %v570_v20 = vand.u32 4294901760, %v5833_v54  ;;  %v5855_v24 = vsub.f32 %v264_v52, %v5841_v61 }
  0x4d   : > { %7094 = vst [vmem:[#allocation17_spill] sm:$0xff] %v5839_v60  ;;  %5028 = vmatpush3.bf16.msra.mxu1 %v5025_v17  ;;  %5076 = vmatpush3.bf16.msra.mxu0 %v5073_v1  ;;  %v580_v45 = vand.u32 4294901760, %v5836_v56  ;;  %v6933_v30 = vand.u32 4294901760, %v5839_v60  ;;  %v5861_v44 = vsub.f32 %v267_v53, %v5846_v0  ;;  %v5863_v32 = vand.u32 4294901760, %v270_v3 }
  0x4e   : > { %7095 = vst [vmem:[#allocation18_spill] sm:$0xff] %v5855_v24  ;;  %4356 = vmatprep.mubr.f32.mxu1 %v522_v36  ;;  %4692 = vmatprep.mubr.f32.mxu0 %v520_v57  ;;  %v6934_v46 = vand.u32 4294901760, %v5855_v24  ;;  %v5866_v52 = vand.u32 4294901760, %v273_v4  ;;  %v571_v22 = vsub.f32 %v5833_v54, %v570_v20  ;;  %v276_v17 = vsel %vm232_vm0, %v174_v25, 0  ;;  %v177_v57 = vld [vmem:[%s5683_s24 + $0x88] sm:$0xff]  ;;  %v180_v54 = vld [vmem:[%s5683_s24 + $0xa0] sm:$0xff] }
  0x4f   : > { %7096 = vst [vmem:[#allocation19_spill] sm:$0xff] %v5861_v44  ;;  %v5870_v1 = vsub.f32 %v270_v3, %v5863_v32  ;;  %4357 = vmatmul.mubr.f32.gmra.mrb[2].mxu1 %v532_v47  ;;  %v552_v53 = vand.u32 4294901760, %v551_v62  ;;  %v562_v36 = vand.u32 4294901760, %v561_v19  ;;  %v581_v10 = vsub.f32 %v5836_v56, %v580_v45 }
  0x50   : > { %4693 = vmatmul.mubr.f32.gmra.mrb[2].mxu0 %v530_v58  ;;  %4359 = vmatprep.mubr.f32.mxu1 %v542_v18  ;;  %v591_v3 = vsub.f32 %v5839_v60, %v6933_v30  ;;  %v5885_v47 = vand.u32 4294901760, %v276_v17  ;;  %v601_v58 = vsub.f32 %v5855_v24, %v6934_v46  ;;  %v5891_v62 = vsub.f32 %v273_v4, %v5866_v52 }
  0x51   : > { %7097 = vst [vmem:[#allocation20_spill] sm:$0xff] %v5870_v1  ;;  %4695 = vmatprep.mubr.f32.mxu0 %v540_v63  ;;  %v279_v63 = vsel %vm232_vm0, %v175_v16, 0  ;;  %v282_v18 = vsel %vm232_vm0, %v176_v11, 0  ;;  %v572_v19 = vand.u32 4294901760, %v571_v22  ;;  %v285_v30 = vsel %vm232_vm0, %v177_v57, 0  ;;  %v178_v16 = vld [vmem:[%s5683_s24 + $0x90] sm:$0xff] }
  0x52   : > { %7098 = vst [vmem:[#allocation21_spill] sm:$0xff] %v5891_v62  ;;  %v5900_v25 = vsub.f32 %v276_v17, %v5885_v47  ;;  %v5902_v46 = vand.u32 4294901760, %v279_v63  ;;  %v5904_v4 = vand.u32 4294901760, %v282_v18  ;;  %v5909_v11 = vsub.f32 %v5685_v2, %v432_v6  ;;  %v179_v6 = vld [vmem:[%s5683_s24 + $0x98] sm:$0xff] }
  0x53   : > { %4360 = vmatmul.mubr.f32.gmra.mrb[4].mxu1 %v552_v53  ;;  %v582_v22 = vand.u32 4294901760, %v581_v10  ;;  %v592_v53 = vand.u32 4294901760, %v591_v3  ;;  %v7100_v57 = vand.u32 4294901760, %v5687_v5  ;;  %v602_v17 = vand.u32 4294901760, %v601_v58 }
  0x54   : > { %4696 = vmatmul.mubr.f32.gmra.mrb[4].mxu0 %v550_v33  ;;  %7099 = vst [vmem:[#allocation22_spill] sm:$0xff] %v5900_v25  ;;  %4362 = vmatprep.mubr.f32.mxu1 %v562_v36  ;;  %v7101_v9 = vand.u32 4294901760, %v5861_v44  ;;  %v1155_v2 = vand.u32 4294901760, %v5909_v11  ;;  %v5926_v10 = vand.u32 4294901760, %v285_v30  ;;  %v7103_v3 = vand.u32 4294901760, %v5870_v1 }
  0x55   : > { %4698 = vmatprep.mubr.f32.mxu0 %v560_v51  ;;  %v5915_v33 = vsub.f32 %v5687_v5, %v7100_v57  ;;  %v5924_v51 = vsub.f32 %v279_v63, %v5902_v46  ;;  %v288_v5 = vsel %vm232_vm0, %v178_v16, 0  ;;  %v5935_v57 = vsub.f32 %v282_v18, %v5904_v4 }
  0x56   : > { %v611_v56 = vsub.f32 %v5861_v44, %v7101_v9  ;;  %v621_v9 = vsub.f32 %v5870_v1, %v7103_v3  ;;  %v1156_v63 = vsub.f32 %v5909_v11, %v1155_v2  ;;  %v291_v34 = vsel %vm232_vm0, %v179_v6, 0 }
  0x57   : > { %7102 = vst [vmem:[#allocation23_spill] sm:$0xff] %v5924_v51  ;;  %v1162_v36 = vand.u32 4294901760, %v5915_v33  ;;  %4363 = vmatmul.mubr.f32.gmra.mrb[6].mxu1 %v572_v19  ;;  %7104 = vst [vmem:[#allocation24_spill] sm:$0xff] %v5935_v57  ;;  %v7106_v58 = vand.u32 4294901760, %v5891_v62  ;;  %v5959_v49 = vand.u32 4294901760, %v291_v34  ;;  %v303_v35 = vsel %vm232_vm0, %v183_v48, 0 }
  0x58   : > { %4699 = vmatmul.mubr.f32.gmra.mrb[6].mxu0 %v570_v20  ;;  %4365 = vmatprep.mubr.f32.mxu1 %v582_v22  ;;  %v5940_v20 = vand.u32 4294901760, %v288_v5  ;;  %v612_v3 = vand.u32 4294901760, %v611_v56  ;;  %v1157_v59 = vand.u32 4294901760, %v1156_v63  ;;  %v5949_v22 = vsub.f32 %v285_v30, %v5926_v10 }
  0x59   : > { %4701 = vmatprep.mubr.f32.mxu0 %v580_v45  ;;  %v1163_v19 = vsub.f32 %v5915_v33, %v1162_v36  ;;  %v5077_v16 = vpack.c.bf16 %v1162_v36, %v1155_v2  ;;  %v631_v18 = vsub.f32 %v5891_v62, %v7106_v58  ;;  %v294_v2 = vsel %vm232_vm0, %v180_v54, 0  ;;  %v182_v36 = vld [vmem:[%s5683_s24 + $0xb0] sm:$0xff]  ;;  %7110 = vst [vmem:[#allocation27_spill] sm:$0xff] %v5959_v49 }
  0x5a   : > { %7105 = vst [vmem:[#allocation25_spill] sm:$0xff] %v5940_v20  ;;  %7107 = vst [vmem:[#allocation26_spill] sm:$0xff] %v5949_v22  ;;  %v7108_v56 = vand.u32 4294901760, %v5839_v60  ;;  %v622_v6 = vand.u32 4294901760, %v621_v9  ;;  %v7109_v58 = vand.u32 4294901760, %v5900_v25  ;;  %v5961_v30 = vand.u32 4294901760, %v294_v2 }
  0x5b   : > { %v1164_v45 = vand.u32 4294901760, %v1163_v19  ;;  %5078 = vmatprep.subr.bf16.mxu0 %v5077_v16  ;;  %4366 = vmatmul.mubr.f32.gmra.mrb[8].mxu1 %v592_v53  ;;  %v7112_v19 = vand.u32 4294901760, %v5855_v24  ;;  %v660_v54 = vand.u32 4294901760, %v5935_v57  ;;  %v5967_v60 = vsub.f32 %v288_v5, %v5940_v20  ;;  %v185_v5 = vld [vmem:[%s5683_s24 + $0xc8] sm:$0xff] }
  0x5c   : > { %4702 = vmatmul.mubr.f32.gmra.mrb[8].mxu0 %v7108_v56  ;;  %v641_v63 = vsub.f32 %v5900_v25, %v7109_v58  ;;  %7111 = vst [vmem:[#allocation28_spill] sm:$0xff] %v5961_v30  ;;  %4368 = vmatprep.mubr.f32.mxu1 %v602_v17  ;;  %v297_v9 = vsel %vm232_vm0, %v181_v55, 0  ;;  %v184_v56 = vld [vmem:[%s5683_s24 + $0xc0] sm:$0xff]  ;;  %v300_v58 = vsel %vm232_vm0, %v182_v36, 0  ;;  %v632_v31 = vand.u32 4294901760, %v631_v18 }
  0x5d   : > { %4704 = vmatprep.mubr.f32.mxu0 %v7112_v19  ;;  %v5029_v53 = vpack.c.bf16 %v1164_v45, %v1157_v59  ;;  %7113 = vst [vmem:[#allocation29_spill] sm:$0xff] %v5967_v60  ;;  %5080 = vmatpush3.bf16.msra.mxu0 %v5077_v16  ;;  %v7114_v17 = vand.u32 4294901760, %v5924_v51  ;;  %v670_v19 = vand.u32 4294901760, %v5949_v22  ;;  %v5977_v59 = vand.u32 4294901760, %v297_v9 }
  0x5e   : > { %v7116_v55 = vand.u32 4294901760, %v5861_v44  ;;  %v5983_v16 = vsub.f32 %v291_v34, %v5959_v49  ;;  %v5986_v48 = vsub.f32 %v294_v2, %v5961_v30  ;;  %v5988_v18 = vand.u32 4294901760, %v300_v58  ;;  %v186_v34 = vld [vmem:[%s5683_s24 + $0xd0] sm:$0xff] }
  0x5f   : > { %v651_v24 = vsub.f32 %v5924_v51, %v7114_v17  ;;  %5030 = vmatprep.subr.bf16.mxu1 %v5029_v53  ;;  %7115 = vst [vmem:[#allocation30_spill] sm:$0xff] %v5977_v59  ;;  %4369 = vmatmul.mubr.f32.gmra.mrb[10].mxu1 %v612_v3  ;;  %v306_v45 = vsel %vm232_vm0, %v184_v56, 0  ;;  %v7120_v36 = vand.u32 4294901760, %v5870_v1  ;;  %v642_v17 = vand.u32 4294901760, %v641_v63  ;;  %v188_v1 = vld [vmem:[%s5683_s24 + $0xe0] sm:$0xff] }
  0x60   : > { %4705 = vmatmul.mubr.f32.gmra.mrb[10].mxu0 %v7116_v55  ;;  %7117 = vst [vmem:[#allocation31_spill] sm:$0xff] %v5983_v16  ;;  %7118 = vst [vmem:[#allocation32_spill] sm:$0xff] %v5986_v48  ;;  %4371 = vmatprep.mubr.f32.mxu1 %v622_v6  ;;  %v661_v3 = vsub.f32 %v5935_v57, %v660_v54  ;;  %v680_v55 = vand.u32 4294901760, %v5967_v60  ;;  %v5995_v44 = vand.u32 4294901760, %v303_v35  ;;  %v5998_v2 = vand.u32 4294901760, %v306_v45 }
  0x61   : > { %7119 = vst [vmem:[#allocation33_spill] sm:$0xff] %v5988_v18  ;;  %4707 = vmatprep.mubr.f32.mxu0 %v7120_v36  ;;  %5032 = vmatpush3.bf16.msra.mxu1 %v5029_v53  ;;  %v309_v30 = vsel %vm232_vm0, %v185_v5, 0  ;;  %v652_v49 = vand.u32 4294901760, %v651_v24  ;;  %v671_v6 = vsub.f32 %v5949_v22, %v670_v19  ;;  %v6003_v56 = vsub.f32 %v297_v9, %v5977_v59  ;;  %v187_v24 = vld [vmem:[%s5683_s24 + $0xd8] sm:$0xff] }
  0x62   : > { %7121 = vst [vmem:[#allocation34_spill] sm:$0xff] %v5995_v44  ;;  %7122 = vst [vmem:[#allocation35_spill] sm:$0xff] %v5998_v2  ;;  %v7124_v63 = vand.u32 4294901760, %v5891_v62  ;;  %v690_v36 = vand.u32 4294901760, %v5983_v16  ;;  %v700_v57 = vand.u32 4294901760, %v5986_v48  ;;  %v6010_v53 = vsub.f32 %v300_v58, %v5988_v18 }
  0x63   : > { %7123 = vst [vmem:[#allocation36_spill] sm:$0xff] %v6003_v56  ;;  %4372 = vmatmul.mubr.f32.gmra.mrb[12].mxu1 %v632_v31  ;;  %v312_v5 = vsel %vm232_vm0, %v186_v34, 0  ;;  %v7126_v22 = vand.u32 4294901760, %v5900_v25  ;;  %v662_v9 = vand.u32 4294901760, %v661_v3  ;;  %v681_v31 = vsub.f32 %v5967_v60, %v680_v55 }
  0x64   : > { %4708 = vmatmul.mubr.f32.gmra.mrb[12].mxu0 %v7124_v63  ;;  %7125 = vst [vmem:[#allocation37_spill] sm:$0xff] %v6010_v53  ;;  %4374 = vmatprep.mubr.f32.mxu1 %v642_v17  ;;  %v6018_v62 = vsub.f32 %v303_v35, %v5995_v44  ;;  %v6020_v63 = vand.u32 4294901760, %v309_v30  ;;  %v6024_v59 = vsub.f32 %v306_v45, %v5998_v2  ;;  %v672_v58 = vand.u32 4294901760, %v671_v6 }
  0x65   : > { %4710 = vmatprep.mubr.f32.mxu0 %v7126_v22  ;;  %v710_v34 = vand.u32 4294901760, %v6003_v56  ;;  %v6027_v17 = vand.u32 4294901760, %v312_v5  ;;  %v315_v22 = vsel %vm232_vm0, %v187_v24, 0  ;;  %v7131_v3 = vand.u32 4294901760, %v5924_v51 }
  0x66   : > { %7127 = vst [vmem:[#allocation38_spill] sm:$0xff] %v6018_v62  ;;  %7128 = vst [vmem:[#allocation39_spill] sm:$0xff] %v6020_v63  ;;  %v691_v35 = vsub.f32 %v5983_v16, %v690_v36  ;;  %v701_v60 = vsub.f32 %v5986_v48, %v700_v57  ;;  %v720_v45 = vand.u32 4294901760, %v6010_v53  ;;  %v318_v6 = vsel %vm232_vm0, %v188_v1, 0  ;;  %v190_v16 = vld [vmem:[%s5683_s24 + $0xf0] sm:$0xff] }
  0x67   : > { %7129 = vst [vmem:[#allocation40_spill] sm:$0xff] %v6024_v59  ;;  %7130 = vst [vmem:[#allocation41_spill] sm:$0xff] %v6027_v17  ;;  %4375 = vmatmul.mubr.f32.gmra.mrb[14].mxu1 %v652_v49  ;;  %v682_v25 = vand.u32 4294901760, %v681_v31  ;;  %v6969_v2 = vand.u32 4294901760, %v6018_v62  ;;  %v6038_v44 = vsub.f32 %v309_v30, %v6020_v63  ;;  %v6041_v24 = vand.u32 4294901760, %v315_v22 }
  0x68   : > { %4711 = vmatmul.mubr.f32.gmra.mrb[14].mxu0 %v7131_v3  ;;  %4377 = vmatprep.mubr.f32.mxu1 %v662_v9  ;;  %v189_v3 = vld [vmem:[%s5683_s24 + $0xe8] sm:$0xff]  ;;  %v711_v48 = vsub.f32 %v6003_v56, %v710_v34  ;;  %v6047_v51 = vsub.f32 %v312_v5, %v6027_v17  ;;  %v6049_v1 = vand.u32 4294901760, %v318_v6  ;;  %v702_v30 = vand.u32 4294901760, %v701_v60  ;;  %v191_v17 = vld [vmem:[%s5683_s24 + $0xf8] sm:$0xff] }
  0x69   : > { %4713 = vmatprep.mubr.f32.mxu0 %v660_v54  ;;  %7132 = vst [vmem:[#allocation42_spill] sm:$0xff] %v6038_v44  ;;  %7133 = vst [vmem:[#allocation43_spill] sm:$0xff] %v6041_v24  ;;  %v692_v54 = vand.u32 4294901760, %v691_v35  ;;  %v721_v9 = vsub.f32 %v6010_v53, %v720_v45  ;;  %v731_v31 = vsub.f32 %v6018_v62, %v6969_v2  ;;  %v321_v5 = vsel %vm232_vm0, %v189_v3, 0  ;;  %v192_v2 = vld [vmem:[%s5683_s24 + $0x100] sm:$0xff] }
  0x6a   : > { %7134 = vst [vmem:[#allocation44_spill] sm:$0xff] %v6047_v51  ;;  %7135 = vst [vmem:[#allocation45_spill] sm:$0xff] %v6049_v1  ;;  %v324_v56 = vsel %vm232_vm0, %v190_v16, 0  ;;  %v6063_v60 = vsub.f32 %v315_v22, %v6041_v24  ;;  %v6067_v35 = vsub.f32 %v318_v6, %v6049_v1  ;;  %v7139_v3 = vand.u32 4294901760, %v5690_v7 }
  0x6b   : > { %4378 = vmatmul.mubr.f32.gmra.mrb[16].mxu1 %v672_v58  ;;  %v6077_v22 = vand.u32 4294901760, %v324_v56  ;;  %v722_v49 = vand.u32 4294901760, %v721_v9  ;;  %v732_v53 = vand.u32 4294901760, %v731_v31 }
  0x6c   : > { %4714 = vmatmul.mubr.f32.gmra.mrb[16].mxu0 %v670_v19  ;;  %4380 = vmatprep.mubr.f32.mxu1 %v682_v25  ;;  %v7136_v19 = vand.u32 4294901760, %v6024_v59  ;;  %7137 = vst [vmem:[#allocation46_spill] sm:$0xff] %v6063_v60  ;;  %v712_v25 = vand.u32 4294901760, %v711_v48  ;;  %7138 = vst [vmem:[#allocation47_spill] sm:$0xff] %v6067_v35  ;;  %v6073_v16 = vsub.f32 %v5690_v7, %v7139_v3  ;;  %v327_v48 = vsel %vm232_vm0, %v191_v17, 0 }
  0x6d   : > { %4716 = vmatprep.mubr.f32.mxu0 %v680_v55  ;;  %7141 = vst [vmem:[#allocation49_spill] sm:$0xff] %v6077_v22  ;;  %v7142_v55 = vand.u32 4294901760, %v5692_v8  ;;  %v7143_v7 = vand.u32 4294901760, %v6038_v44  ;;  %v330_v17 = vsel %vm232_vm0, %v192_v2, 0  ;;  %v6098_v31 = vand.u32 4294901760, %v327_v48 }
  0x6e   : > { %v741_v58 = vsub.f32 %v6024_v59, %v7136_v19  ;;  %v6075_v19 = vand.u32 4294901760, %v321_v5  ;;  %v1169_v3 = vand.u32 4294901760, %v6073_v16  ;;  %v6105_v2 = vsub.f32 %v324_v56, %v6077_v22 }
  0x6f   : > { %4381 = vmatmul.mubr.f32.gmra.mrb[18].mxu1 %v692_v54  ;;  %v6083_v6 = vsub.f32 %v5692_v8, %v7142_v55  ;;  %v193_v54 = vld [vmem:[%s5683_s24 + $0x108] sm:$0xff]  ;;  %v194_v8 = vld [vmem:[%s5683_s24 + $0x110] sm:$0xff]  ;;  %7145 = vst [vmem:[#allocation50_spill] sm:$0xff] %v6098_v31  ;;  %v6109_v9 = vand.u32 4294901760, %v330_v17  ;;  %v7149_v56 = vand.u32 4294901760, %v6063_v60 }
  0x70   : > { %4717 = vmatmul.mubr.f32.gmra.mrb[18].mxu0 %v690_v36  ;;  %7140 = vst [vmem:[#allocation48_spill] sm:$0xff] %v6075_v19  ;;  %4383 = vmatprep.mubr.f32.mxu1 %v702_v30  ;;  %v751_v36 = vsub.f32 %v6038_v44, %v7143_v7  ;;  %v742_v1 = vand.u32 4294901760, %v741_v58  ;;  %v7144_v30 = vand.u32 4294901760, %v6047_v51  ;;  %v1170_v55 = vsub.f32 %v6073_v16, %v1169_v3 }
  0x71   : > { %4719 = vmatprep.mubr.f32.mxu0 %v700_v57  ;;  %v1176_v63 = vand.u32 4294901760, %v6083_v6  ;;  %v6102_v58 = vsub.f32 %v321_v5, %v6075_v19  ;;  %7147 = vst [vmem:[#allocation52_spill] sm:$0xff] %v6105_v2  ;;  %v333_v7 = vsel %vm232_vm0, %v193_v54, 0  ;;  %7148 = vst [vmem:[#allocation53_spill] sm:$0xff] %v6109_v9  ;;  %v771_v22 = vsub.f32 %v6063_v60, %v7149_v56 }
  0x72   : > { %v761_v57 = vsub.f32 %v6047_v51, %v7144_v30  ;;  %v1171_v24 = vand.u32 4294901760, %v1170_v55  ;;  %v752_v19 = vand.u32 4294901760, %v751_v36  ;;  %v6117_v54 = vsub.f32 %v327_v48, %v6098_v31  ;;  %v198_v48 = vld [vmem:[%s5683_s24 + $0x130] sm:$0xff] }
  0x73   : > { %4384 = vmatmul.mubr.f32.gmra.mrb[20].mxu1 %v712_v25  ;;  %7146 = vst [vmem:[#allocation51_spill] sm:$0xff] %v6102_v58  ;;  %v1177_v30 = vsub.f32 %v6083_v6, %v1176_v63  ;;  %v5081_v18 = vpack.c.bf16 %v1176_v63, %v1169_v3  ;;  %v195_v25 = vld [vmem:[%s5683_s24 + $0x118] sm:$0xff]  ;;  %v6119_v20 = vand.u32 4294901760, %v333_v7  ;;  %v7152_v63 = vand.u32 4294901760, %v6018_v62 }
  0x74   : > { %4720 = vmatmul.mubr.f32.gmra.mrb[20].mxu0 %v710_v34  ;;  %4386 = vmatprep.mubr.f32.mxu1 %v722_v49  ;;  %v336_v34 = vsel %vm232_vm0, %v194_v8, 0  ;;  %7150 = vst [vmem:[#allocation54_spill] sm:$0xff] %v6117_v54  ;;  %v197_v49 = vld [vmem:[%s5683_s24 + $0x128] sm:$0xff]  ;;  %v7153_v3 = vand.u32 4294901760, %v6067_v35  ;;  %v790_v8 = vand.u32 4294901760, %v6102_v58  ;;  %v7155_v56 = vand.u32 4294901760, %v6024_v59 }
  0x75   : > { %4722 = vmatprep.mubr.f32.mxu0 %v720_v45  ;;  %v1178_v5 = vand.u32 4294901760, %v1177_v30  ;;  %7151 = vst [vmem:[#allocation55_spill] sm:$0xff] %v6119_v20  ;;  %5082 = vmatprep.subr.bf16.mxu0 %v5081_v18  ;;  %v196_v45 = vld [vmem:[%s5683_s24 + $0x120] sm:$0xff]  ;;  %v6129_v30 = vand.u32 4294901760, %v336_v34  ;;  %v762_v31 = vand.u32 4294901760, %v761_v57  ;;  %v6136_v62 = vsub.f32 %v330_v17, %v6109_v9 }
  0x76   : > { %v781_v36 = vsub.f32 %v6067_v35, %v7153_v3  ;;  %5084 = vmatpush3.bf16.msra.mxu0 %v5081_v18  ;;  %v772_v3 = vand.u32 4294901760, %v771_v22  ;;  %v348_v57 = vsel %vm232_vm0, %v198_v48, 0  ;;  %v7158_v17 = vand.u32 4294901760, %v6038_v44  ;;  %v200_v44 = vld [vmem:[%s5683_s24 + $0x140] sm:$0xff] }
  0x77   : > { %4387 = vmatmul.mubr.f32.gmra.mrb[22].mxu1 %v732_v53  ;;  %v5033_v55 = vpack.c.bf16 %v1178_v5, %v1171_v24  ;;  %7154 = vst [vmem:[#allocation56_spill] sm:$0xff] %v6129_v30  ;;  %v800_v53 = vand.u32 4294901760, %v6105_v2  ;;  %7156 = vst [vmem:[#allocation57_spill] sm:$0xff] %v6136_v62  ;;  %v342_v24 = vsel %vm232_vm0, %v196_v45, 0  ;;  %v345_v5 = vsel %vm232_vm0, %v197_v49, 0  ;;  %v199_v49 = vld [vmem:[%s5683_s24 + $0x138] sm:$0xff] }
  0x78   : > { %4723 = vmatmul.mubr.f32.gmra.mrb[22].mxu0 %v7152_v63  ;;  %4389 = vmatprep.mubr.f32.mxu1 %v742_v1  ;;  %v339_v63 = vsel %vm232_vm0, %v195_v25, 0  ;;  %v810_v1 = vand.u32 4294901760, %v6117_v54  ;;  %v782_v25 = vand.u32 4294901760, %v781_v36  ;;  %v791_v18 = vsub.f32 %v6102_v58, %v790_v8 }
  0x79   : > { %4725 = vmatprep.mubr.f32.mxu0 %v7155_v56  ;;  %5034 = vmatprep.subr.bf16.mxu1 %v5033_v55  ;;  %v6143_v56 = vsub.f32 %v333_v7, %v6119_v20  ;;  %v6150_v45 = vsub.f32 %v336_v34, %v6129_v30  ;;  %v6152_v22 = vand.u32 4294901760, %v339_v63  ;;  %v7161_v7 = vand.u32 4294901760, %v6047_v51 }
  0x7a   : > { %5036 = vmatpush3.bf16.msra.mxu1 %v5033_v55  ;;  %v801_v55 = vsub.f32 %v6105_v2, %v800_v53  ;;  %v6159_v48 = vand.u32 4294901760, %v342_v24  ;;  %v6163_v36 = vand.u32 4294901760, %v348_v57  ;;  %v351_v58 = vsel %vm232_vm0, %v199_v49, 0 }
  0x7b   : > { %7157 = vst [vmem:[#allocation58_spill] sm:$0xff] %v6143_v56  ;;  %4390 = vmatmul.mubr.f32.gmra.mrb[24].mxu1 %v752_v19  ;;  %7159 = vst [vmem:[#allocation59_spill] sm:$0xff] %v6150_v45  ;;  %v820_v19 = vand.u32 4294901760, %v6136_v62  ;;  %v830_v34 = vand.u32 4294901760, %v6143_v56  ;;  %v811_v2 = vsub.f32 %v6117_v54, %v810_v1  ;;  %v840_v51 = vand.u32 4294901760, %v6150_v45 }
  0x7c   : > { %4726 = vmatmul.mubr.f32.gmra.mrb[24].mxu0 %v7158_v17  ;;  %7160 = vst [vmem:[#allocation60_spill] sm:$0xff] %v6152_v22  ;;  %4392 = vmatprep.mubr.f32.mxu1 %v762_v31  ;;  %7162 = vst [vmem:[#allocation61_spill] sm:$0xff] %v6159_v48  ;;  %v6161_v17 = vand.u32 4294901760, %v345_v5  ;;  %v7165_v31 = vand.u32 4294901760, %v6063_v60  ;;  %v6173_v59 = vsub.f32 %v339_v63, %v6152_v22  ;;  %v7167_v30 = vand.u32 4294901760, %v6067_v35 }
  0x7d   : > { %4728 = vmatprep.mubr.f32.mxu0 %v7161_v7  ;;  %7164 = vst [vmem:[#allocation63_spill] sm:$0xff] %v6163_v36  ;;  %v792_v7 = vand.u32 4294901760, %v791_v18  ;;  %v802_v20 = vand.u32 4294901760, %v801_v55  ;;  %v821_v49 = vsub.f32 %v6136_v62, %v820_v19  ;;  %v201_v18 = vld [vmem:[%s5683_s24 + $0x148] sm:$0xff]  ;;  %v6186_v54 = vsub.f32 %v348_v57, %v6163_v36 }
  0x7e   : > { %7163 = vst [vmem:[#allocation62_spill] sm:$0xff] %v6161_v17  ;;  %7166 = vst [vmem:[#allocation64_spill] sm:$0xff] %v6173_v59  ;;  %v6188_v60 = vand.u32 4294901760, %v351_v58  ;;  %v354_v63 = vsel %vm232_vm0, %v200_v44, 0  ;;  %v841_v55 = vsub.f32 %v6150_v45, %v840_v51  ;;  %v357_v62 = vsel %vm232_vm0, %v201_v18, 0 }
  0x7f   : > { %4393 = vmatmul.mubr.f32.gmra.mrb[26].mxu1 %v772_v3  ;;  %v6179_v3 = vsub.f32 %v342_v24, %v6159_v48  ;;  %7170 = vst [vmem:[#allocation67_spill] sm:$0xff] %v6186_v54  ;;  %v812_v24 = vand.u32 4294901760, %v811_v2  ;;  %v822_v57 = vand.u32 4294901760, %v821_v49  ;;  %v6198_v36 = vand.u32 4294901760, %v354_v63  ;;  %v205_v48 = vld [vmem:[%s5683_s24 + $0x168] sm:$0xff] }
  0x80   : > { %4729 = vmatmul.mubr.f32.gmra.mrb[26].mxu0 %v7165_v31  ;;  %4395 = vmatprep.mubr.f32.mxu1 %v782_v25  ;;  %v6182_v31 = vsub.f32 %v345_v5, %v6161_v17  ;;  %7171 = vst [vmem:[#allocation68_spill] sm:$0xff] %v6188_v60  ;;  %v202_v25 = vld [vmem:[%s5683_s24 + $0x150] sm:$0xff]  ;;  %v850_v5 = vand.u32 4294901760, %v6173_v59  ;;  %v842_v49 = vand.u32 4294901760, %v841_v55  ;;  %v7178_v55 = vand.u32 4294901760, %v6186_v54 }
  0x81   : > { %4731 = vmatprep.mubr.f32.mxu0 %v7167_v30  ;;  %7168 = vst [vmem:[#allocation65_spill] sm:$0xff] %v6179_v3  ;;  %v831_v30 = vsub.f32 %v6143_v56, %v830_v34  ;;  %v860_v35 = vand.u32 4294901760, %v6179_v3  ;;  %7172 = vst [vmem:[#allocation69_spill] sm:$0xff] %v6198_v36  ;;  %v203_v56 = vld [vmem:[%s5683_s24 + $0x158] sm:$0xff]  ;;  %v360_v45 = vsel %vm232_vm0, %v202_v25, 0  ;;  %v6218_v2 = vsub.f32 %v354_v63, %v6198_v36 }
  0x82   : > { %7169 = vst [vmem:[#allocation66_spill] sm:$0xff] %v6182_v31  ;;  %v851_v18 = vsub.f32 %v6173_v59, %v850_v5  ;;  %v363_v44 = vsel %vm232_vm0, %v203_v56, 0  ;;  %v7175_v25 = vand.u32 4294901760, %v6182_v31  ;;  %v881_v56 = vsub.f32 %v6186_v54, %v7178_v55 }
  0x83   : > { %4396 = vmatmul.mubr.f32.gmra.mrb[28].mxu1 %v792_v7  ;;  %v204_v7 = vld [vmem:[%s5683_s24 + $0x160] sm:$0xff]  ;;  %7176 = vst [vmem:[#allocation72_spill] sm:$0xff] %v6218_v2  ;;  %v6235_v63 = vand.u32 4294901760, %v363_v44  ;;  %v369_v59 = vsel %vm232_vm0, %v205_v48, 0 }
  0x84   : > { %4732 = vmatmul.mubr.f32.gmra.mrb[28].mxu0 %v790_v8  ;;  %4398 = vmatprep.mubr.f32.mxu1 %v802_v20  ;;  %v6204_v8 = vsub.f32 %v351_v58, %v6188_v60  ;;  %v832_v20 = vand.u32 4294901760, %v831_v30  ;;  %v366_v17 = vsel %vm232_vm0, %v204_v7, 0  ;;  %v861_v58 = vsub.f32 %v6179_v3, %v860_v35 }
  0x85   : > { %4734 = vmatprep.mubr.f32.mxu0 %v800_v53  ;;  %v6207_v53 = vand.u32 4294901760, %v357_v62  ;;  %v871_v30 = vsub.f32 %v6182_v31, %v7175_v25  ;;  %7181 = vst [vmem:[#allocation75_spill] sm:$0xff] %v6235_v63  ;;  %v6237_v25 = vand.u32 4294901760, %v366_v17  ;;  %v852_v55 = vand.u32 4294901760, %v851_v18 }
  0x86   : > { %7173 = vst [vmem:[#allocation70_spill] sm:$0xff] %v6204_v8  ;;  %v900_v60 = vand.u32 4294901760, %v6218_v2 }
  0x87   : > { %7174 = vst [vmem:[#allocation71_spill] sm:$0xff] %v6207_v53  ;;  %4399 = vmatmul.mubr.f32.gmra.mrb[30].mxu1 %v812_v24  ;;  %v206_v24 = vld [vmem:[%s5683_s24 + $0x170] sm:$0xff]  ;;  %v6233_v3 = vsub.f32 %v357_v62, %v6207_v53  ;;  %7182 = vst [vmem:[#allocation76_spill] sm:$0xff] %v6237_v25  ;;  %v862_v62 = vand.u32 4294901760, %v861_v58  ;;  %v872_v53 = vand.u32 4294901760, %v871_v30  ;;  %v208_v30 = vld [vmem:[%s5683_s24 + $0x180] sm:$0xff] }
  0x88   : > { %4735 = vmatmul.mubr.f32.gmra.mrb[30].mxu0 %v810_v1  ;;  %4401 = vmatprep.mubr.f32.mxu1 %v822_v57  ;;  %v6220_v1 = vand.u32 4294901760, %v360_v45  ;;  %v372_v7 = vsel %vm232_vm0, %v206_v24, 0  ;;  %v6255_v24 = vand.u32 4294901760, %v369_v59 }
  0x89   : > { %4737 = vmatprep.mubr.f32.mxu0 %v820_v19  ;;  %v7179_v19 = vand.u32 4294901760, %v5697_v12  ;;  %7180 = vst [vmem:[#allocation74_spill] sm:$0xff] %v6233_v3  ;;  %v6266_v58 = vand.u32 4294901760, %v372_v7 }
  0x8a   : > { %7177 = vst [vmem:[#allocation73_spill] sm:$0xff] %v6220_v1  ;;  %v6249_v48 = vsub.f32 %v360_v45, %v6220_v1  ;;  %v6264_v45 = vsub.f32 %v366_v17, %v6237_v25  ;;  %v209_v25 = vld [vmem:[%s5683_s24 + $0x188] sm:$0xff] }
  0x8b   : > { %v6230_v57 = vsub.f32 %v5697_v12, %v7179_v19  ;;  %4402 = vmatmul.mubr.f32.gmra.mrb[32].mxu1 %v832_v20  ;;  %v7183_v12 = vand.u32 4294901760, %v5699_v13  ;;  %v7185_v20 = vand.u32 4294901760, %v6204_v8 }
  0x8c   : > { %4738 = vmatmul.mubr.f32.gmra.mrb[32].mxu0 %v830_v34  ;;  %4404 = vmatprep.mubr.f32.mxu1 %v842_v49  ;;  %7184 = vst [vmem:[#allocation77_spill] sm:$0xff] %v6249_v48  ;;  %v207_v34 = vld [vmem:[%s5683_s24 + $0x178] sm:$0xff]  ;;  %v6261_v49 = vsub.f32 %v363_v44, %v6235_v63  ;;  %7187 = vst [vmem:[#allocation79_spill] sm:$0xff] %v6264_v45  ;;  %v901_v44 = vsub.f32 %v6218_v2, %v900_v60  ;;  %v920_v17 = vand.u32 4294901760, %v6249_v48 }
  0x8d   : > { %v1183_v36 = vand.u32 4294901760, %v6230_v57  ;;  %v6245_v19 = vsub.f32 %v5699_v13, %v7183_v12  ;;  %4740 = vmatprep.mubr.f32.mxu0 %v840_v51  ;;  %v891_v18 = vsub.f32 %v6204_v8, %v7185_v20  ;;  %v375_v20 = vsel %vm232_vm0, %v207_v34, 0 }
  0x8e   : > { %7186 = vst [vmem:[#allocation78_spill] sm:$0xff] %v6261_v49  ;;  %v882_v51 = vand.u32 4294901760, %v881_v56  ;;  %v6275_v63 = vsub.f32 %v369_v59, %v6255_v24  ;;  %v6282_v56 = vand.u32 4294901760, %v375_v20  ;;  %v7191_v59 = vand.u32 4294901760, %v6182_v31  ;;  %v211_v31 = vld [vmem:[%s5683_s24 + $0x198] sm:$0xff] }
  0x8f   : > { %v1184_v13 = vsub.f32 %v6230_v57, %v1183_v36  ;;  %v1190_v12 = vand.u32 4294901760, %v6245_v19  ;;  %4405 = vmatmul.mubr.f32.gmra.mrb[34].mxu1 %v852_v55  ;;  %v892_v34 = vand.u32 4294901760, %v891_v18  ;;  %v381_v18 = vsel %vm232_vm0, %v209_v25, 0 }
  0x90   : > { %4741 = vmatmul.mubr.f32.gmra.mrb[34].mxu0 %v850_v5  ;;  %4407 = vmatprep.mubr.f32.mxu1 %v862_v62  ;;  %7188 = vst [vmem:[#allocation80_spill] sm:$0xff] %v6275_v63  ;;  %v378_v5 = vsel %vm232_vm0, %v208_v30, 0  ;;  %7190 = vst [vmem:[#allocation81_spill] sm:$0xff] %v6282_v56  ;;  %v210_v62 = vld [vmem:[%s5683_s24 + $0x190] sm:$0xff]  ;;  %v902_v2 = vand.u32 4294901760, %v901_v44  ;;  %v212_v44 = vld [vmem:[%s5683_s24 + $0x1a0] sm:$0xff] }
  0x91   : > { %v1185_v1 = vand.u32 4294901760, %v1184_v13  ;;  %v1191_v22 = vsub.f32 %v6245_v19, %v1190_v12  ;;  %v5085_v9 = vpack.c.bf16 %v1190_v12, %v1183_v36  ;;  %4743 = vmatprep.mubr.f32.mxu0 %v860_v35  ;;  %v7189_v13 = vand.u32 4294901760, %v6233_v3 }
  0x92   : > { %v930_v35 = vand.u32 4294901760, %v6261_v49  ;;  %v940_v12 = vand.u32 4294901760, %v6264_v45 }
  0x93   : > { %v1192_v55 = vand.u32 4294901760, %v1191_v22  ;;  %5086 = vmatprep.subr.bf16.mxu0 %v5085_v9  ;;  %v911_v36 = vsub.f32 %v6233_v3, %v7189_v13  ;;  %4408 = vmatmul.mubr.f32.gmra.mrb[36].mxu1 %v872_v53  ;;  %v6289_v22 = vsub.f32 %v372_v7, %v6266_v58  ;;  %v7193_v13 = vand.u32 4294901760, %v6186_v54 }
  0x94   : > { %5088 = vmatpush3.bf16.msra.mxu0 %v5085_v9  ;;  %4410 = vmatprep.mubr.f32.mxu1 %v882_v51  ;;  %v921_v9 = vsub.f32 %v6249_v48, %v920_v17  ;;  %v6295_v53 = vand.u32 4294901760, %v378_v5  ;;  %v384_v7 = vsel %vm232_vm0, %v210_v62, 0  ;;  %v6304_v51 = vand.u32 4294901760, %v381_v18 }
  0x95   : > { %4744 = vmatmul.mubr.f32.gmra.mrb[36].mxu0 %v7191_v59  ;;  %7192 = vst [vmem:[#allocation82_spill] sm:$0xff] %v6289_v22  ;;  %v5037_v30 = vpack.c.bf16 %v1192_v55, %v1185_v1  ;;  %5090 = vmatprep.subr.bf16.mxu0 %v5702_v15  ;;  %v912_v25 = vand.u32 4294901760, %v911_v36  ;;  %v6302_v1 = vsub.f32 %v375_v20, %v6282_v56  ;;  %v7197_v55 = vand.u32 4294901760, %v6204_v8 }
  0x96   : > { %4746 = vmatprep.mubr.f32.mxu0 %v7193_v13  ;;  %7194 = vst [vmem:[#allocation83_spill] sm:$0xff] %v6295_v53  ;;  %7196 = vst [vmem:[#allocation85_spill] sm:$0xff] %v6304_v51  ;;  %v931_v13 = vsub.f32 %v6261_v49, %v930_v35  ;;  %v941_v62 = vsub.f32 %v6264_v45, %v940_v12  ;;  %v960_v59 = vand.u32 4294901760, %v6289_v22  ;;  %v387_v36 = vsel %vm232_vm0, %v211_v31, 0  ;;  %v214_v45 = vld [vmem:[%s5683_s24 + $0x1b0] sm:$0xff] }
  0x97   : > { %5038 = vmatprep.subr.bf16.mxu1 %v5037_v30  ;;  %7195 = vst [vmem:[#allocation84_spill] sm:$0xff] %v6302_v1  ;;  %4411 = vmatmul.mubr.f32.gmra.mrb[38].mxu1 %v892_v34  ;;  %v922_v20 = vand.u32 4294901760, %v921_v9  ;;  %v6314_v48 = vsub.f32 %v378_v5, %v6295_v53  ;;  %v213_v34 = vld [vmem:[%s5683_s24 + $0x1a8] sm:$0xff]  ;;  %v7199_v8 = vand.u32 4294901760, %v6275_v63  ;;  %v390_v49 = vsel %vm232_vm0, %v212_v44, 0 }
  0x98   : > { %5040 = vmatpush3.bf16.msra.mxu1 %v5037_v30  ;;  %4413 = vmatprep.mubr.f32.mxu1 %v902_v2  ;;  %v6316_v30 = vand.u32 4294901760, %v384_v7  ;;  %v970_v54 = vand.u32 4294901760, %v6302_v1  ;;  %v6328_v31 = vand.u32 4294901760, %v387_v36  ;;  %v7201_v2 = vand.u32 4294901760, %v6233_v3  ;;  %v216_v3 = vld [vmem:[%s5683_s24 + $0x1c0] sm:$0xff] }
  0x99   : > { %4747 = vmatmul.mubr.f32.gmra.mrb[38].mxu0 %v7197_v55  ;;  %7198 = vst [vmem:[#allocation86_spill] sm:$0xff] %v6314_v48  ;;  %v951_v55 = vsub.f32 %v6275_v63, %v7199_v8  ;;  %v932_v5 = vand.u32 4294901760, %v931_v13  ;;  %v942_v9 = vand.u32 4294901760, %v941_v62  ;;  %v961_v8 = vsub.f32 %v6289_v22, %v960_v59 }
  0x9a   : > { %4749 = vmatprep.mubr.f32.mxu0 %v900_v60  ;;  %v6326_v60 = vsub.f32 %v381_v18, %v6304_v51  ;;  %v393_v44 = vsel %vm232_vm0, %v213_v34, 0  ;;  %v980_v53 = vand.u32 4294901760, %v6314_v48  ;;  %v6336_v56 = vsub.f32 %v384_v7, %v6316_v30  ;;  %v215_v51 = vld [vmem:[%s5683_s24 + $0x1b8] sm:$0xff] }
  0x9b   : > { %4414 = vmatmul.mubr.f32.gmra.mrb[40].mxu1 %v912_v25  ;;  %v6338_v18 = vand.u32 4294901760, %v390_v49  ;;  %v396_v25 = vsel %vm232_vm0, %v214_v45, 0  ;;  %v971_v13 = vsub.f32 %v6302_v1, %v970_v54  ;;  %v399_v34 = vsel %vm232_vm0, %v215_v51, 0 }
  0x9c   : > { %7200 = vst [vmem:[#allocation87_spill] sm:$0xff] %v6326_v60  ;;  %4416 = vmatprep.mubr.f32.mxu1 %v922_v20  ;;  %7202 = vst [vmem:[#allocation88_spill] sm:$0xff] %v6336_v56  ;;  %v990_v62 = vand.u32 4294901760, %v6326_v60  ;;  %v6346_v20 = vsub.f32 %v387_v36, %v6328_v31  ;;  %v6350_v7 = vand.u32 4294901760, %v396_v25  ;;  %v402_v45 = vsel %vm232_vm0, %v216_v3, 0 }
  0x9d   : > { %4750 = vmatmul.mubr.f32.gmra.mrb[40].mxu0 %v7201_v2  ;;  %7203 = vst [vmem:[#allocation89_spill] sm:$0xff] %v6338_v18  ;;  %v952_v2 = vand.u32 4294901760, %v951_v55  ;;  %v6356_v55 = vpack.c.bf16 %v5732_v29, %v5730_v28  ;;  %v962_v1 = vand.u32 4294901760, %v961_v8  ;;  %v981_v36 = vsub.f32 %v6314_v48, %v980_v53 }
  0x9e   : > { %4752 = vmatprep.mubr.f32.mxu0 %v920_v17  ;;  %7204 = vst [vmem:[#allocation90_spill] sm:$0xff] %v6346_v20  ;;  %v6348_v17 = vand.u32 4294901760, %v393_v44  ;;  %7206 = vst [vmem:[#allocation92_spill] sm:$0xff] %v6350_v7  ;;  %v1000_v22 = vand.u32 4294901760, %v6336_v56  ;;  %v6367_v3 = vpack.c.bf16 %v6083_v6, %v6073_v16  ;;  %v1010_v28 = vand.u32 4294901760, %v6346_v20 }
  0x9f   : > { %4417 = vmatmul.mubr.f32.gmra.mrb[42].mxu1 %v932_v5  ;;  %v217_v5 = vld [vmem:[%s5683_s24 + $0x1c8] sm:$0xff]  ;;  %5042 = vmatprep.subr.bf16.mxu1 %v6356_v55  ;;  %v6375_v51 = vand.u32 4294901760, %v402_v45  ;;  %v972_v8 = vand.u32 4294901760, %v971_v13  ;;  %v991_v16 = vsub.f32 %v6326_v60, %v990_v62  ;;  %v6382_v6 = vsub.f32 %v396_v25, %v6350_v7 }
  0xa0   : > { %7205 = vst [vmem:[#allocation91_spill] sm:$0xff] %v6348_v17  ;;  %4419 = vmatprep.mubr.f32.mxu1 %v942_v9  ;;  %v6371_v29 = vsub.f32 %v393_v44, %v6348_v17  ;;  %v218_v9 = vld [vmem:[%s5683_s24 + $0x1d0] sm:$0xff]  ;;  %v982_v44 = vand.u32 4294901760, %v981_v36  ;;  %v1001_v48 = vsub.f32 %v6336_v56, %v1000_v22 }
  0xa1   : > { %4753 = vmatmul.mubr.f32.gmra.mrb[42].mxu0 %v930_v35  ;;  %v6361_v35 = vsub.f32 %v390_v49, %v6338_v18  ;;  %7210 = vst [vmem:[#allocation96_spill] sm:$0xff] %v6375_v51  ;;  %v7211_v49 = vand.u32 4294901760, %v6275_v63  ;;  %7212 = vst [vmem:[#allocation97_spill] sm:$0xff] %v6382_v6  ;;  %v405_v18 = vsel %vm232_vm0, %v217_v5, 0  ;;  %v219_v63 = vld [vmem:[%s5683_s24 + $0x1d8] sm:$0xff]  ;;  %v992_v36 = vand.u32 4294901760, %v991_v16 }
  0xa2   : > { %4755 = vmatprep.mubr.f32.mxu0 %v940_v12  ;;  %7208 = vst [vmem:[#allocation94_spill] sm:$0xff] %v6371_v29  ;;  %v6373_v12 = vand.u32 4294901760, %v399_v34  ;;  %v1030_v13 = vand.u32 4294901760, %v6371_v29  ;;  %v1040_v5 = vand.u32 4294901760, %v6382_v6 }
  0xa3   : > { %7207 = vst [vmem:[#allocation93_spill] sm:$0xff] %v6361_v35  ;;  %4420 = vmatmul.mubr.f32.gmra.mrb[44].mxu1 %v952_v2  ;;  %v1020_v17 = vand.u32 4294901760, %v6361_v35  ;;  %v408_v2 = vsel %vm232_vm0, %v218_v9, 0  ;;  %v6399_v9 = vand.u32 4294901760, %v405_v18 }
  0xa4   : > { %7209 = vst [vmem:[#allocation95_spill] sm:$0xff] %v6373_v12  ;;  %4422 = vmatprep.mubr.f32.mxu1 %v962_v1  ;;  %v6392_v25 = vsub.f32 %v399_v34, %v6373_v12  ;;  %v220_v1 = vld [vmem:[%s5683_s24 + $0x1e0] sm:$0xff]  ;;  %v6402_v60 = vand.u32 4294901760, %v408_v2  ;;  %v411_v34 = vsel %vm232_vm0, %v219_v63, 0 }
  0xa5   : > { %4756 = vmatmul.mubr.f32.gmra.mrb[44].mxu0 %v7211_v49  ;;  %v1011_v49 = vsub.f32 %v6346_v20, %v1010_v28  ;;  %7215 = vst [vmem:[#allocation100_spill] sm:$0xff] %v6399_v9  ;;  %v1002_v20 = vand.u32 4294901760, %v1001_v48  ;;  %v1021_v56 = vsub.f32 %v6361_v35, %v1020_v17  ;;  %v1041_v48 = vsub.f32 %v6382_v6, %v1040_v5 }
  0xa6   : > { %4758 = vmatprep.mubr.f32.mxu0 %v960_v59  ;;  %7213 = vst [vmem:[#allocation98_spill] sm:$0xff] %v6392_v25  ;;  %v6395_v59 = vsub.f32 %v402_v45, %v6375_v51  ;;  %7216 = vst [vmem:[#allocation101_spill] sm:$0xff] %v6402_v60  ;;  %v414_v45 = vsel %vm232_vm0, %v220_v1, 0  ;;  %v221_v51 = vld [vmem:[%s5683_s24 + $0x1e8] sm:$0xff]  ;;  %v1050_v16 = vand.u32 4294901760, %v6392_v25  ;;  %v6415_v63 = vand.u32 4294901760, %v411_v34 }
  0xa7   : > { %4423 = vmatmul.mubr.f32.gmra.mrb[46].mxu1 %v972_v8  ;;  %v1012_v8 = vand.u32 4294901760, %v1011_v49  ;;  %v6419_v49 = vpack.c.bf16 %v6245_v19, %v6230_v57  ;;  %v1022_v1 = vand.u32 4294901760, %v1021_v56  ;;  %v6424_v35 = vand.u32 4294901760, %v414_v45 }
  0xa8   : > { %7214 = vst [vmem:[#allocation99_spill] sm:$0xff] %v6395_v59  ;;  %4425 = vmatprep.mubr.f32.mxu1 %v982_v44  ;;  %v1060_v12 = vand.u32 4294901760, %v6395_v59  ;;  %v222_v44 = vld [vmem:[%s5683_s24 + $0x1f0] sm:$0xff]  ;;  %7218 = vst [vmem:[#allocation103_spill] sm:$0xff] %v6415_v63  ;;  %v1042_v57 = vand.u32 4294901760, %v1041_v48  ;;  %v6433_v56 = vsub.f32 %v411_v34, %v6415_v63 }
  0xa9   : > { %4759 = vmatmul.mubr.f32.gmra.mrb[46].mxu0 %v970_v54  ;;  %v1031_v54 = vsub.f32 %v6371_v29, %v1030_v13  ;;  %v6422_v29 = vsub.f32 %v408_v2, %v6402_v60  ;;  %7220 = vst [vmem:[#allocation105_spill] sm:$0xff] %v6424_v35 }
  0xaa   : > { %4761 = vmatprep.mubr.f32.mxu0 %v980_v53  ;;  %v6413_v53 = vsub.f32 %v405_v18, %v6399_v9  ;;  %v223_v18 = vld [vmem:[%s5683_s24 + $0x1f8] sm:$0xff]  ;;  %v1051_v9 = vsub.f32 %v6392_v25, %v1050_v16  ;;  %v1061_v7 = vsub.f32 %v6395_v59, %v1060_v12  ;;  %7221 = vst [vmem:[#allocation106_spill] sm:$0xff] %v6433_v56  ;;  %v1090_v34 = vand.u32 4294901760, %v6433_v56  ;;  %v7263_v59 = vld [vmem:[#allocation96_spill] sm:$0xff] }
  0xab   : > { %4426 = vmatmul.mubr.f32.gmra.mrb[48].mxu1 %v992_v36  ;;  %7219 = vst [vmem:[#allocation104_spill] sm:$0xff] %v6422_v29  ;;  %v420_v36 = vsel %vm232_vm0, %v222_v44, 0  ;;  %v1032_v6 = vand.u32 4294901760, %v1031_v54 }
  0xac   : > { %7217 = vst [vmem:[#allocation102_spill] sm:$0xff] %v6413_v53  ;;  %4428 = vmatprep.mubr.f32.mxu1 %v1002_v20  ;;  %v1070_v19 = vand.u32 4294901760, %v6413_v53  ;;  %v1080_v20 = vand.u32 4294901760, %v6422_v29  ;;  %v6441_v2 = vand.u32 4294901760, %v420_v36  ;;  %v7264_v25 = vld [vmem:[#allocation100_spill] sm:$0xff] }
  0xad   : > { %4762 = vmatmul.mubr.f32.gmra.mrb[48].mxu0 %v990_v62  ;;  %v417_v62 = vsel %vm232_vm0, %v221_v51, 0  ;;  %v6439_v51 = vsub.f32 %v414_v45, %v6424_v35  ;;  %v1062_v45 = vand.u32 4294901760, %v1061_v7 }
  0xae   : > { %4764 = vmatprep.mubr.f32.mxu0 %v1000_v22  ;;  %v6435_v22 = vand.u32 4294901760, %v417_v62  ;;  %7224 = vst [vmem:[#allocation109_spill] sm:$0xff] %v6441_v2  ;;  %v1071_v54 = vsub.f32 %v6413_v53, %v1070_v19  ;;  %v1081_v48 = vsub.f32 %v6422_v29, %v1080_v20  ;;  %v7261_v29 = vld [vmem:[#allocation92_spill] sm:$0xff]  ;;  %v7262_v53 = vld [vmem:[#allocation95_spill] sm:$0xff] }
  0xaf   : > { %4429 = vmatmul.mubr.f32.gmra.mrb[50].mxu1 %v1012_v8  ;;  %7223 = vst [vmem:[#allocation108_spill] sm:$0xff] %v6439_v51  ;;  %v423_v8 = vsel %vm232_vm0, %v223_v18, 0 }
  0xb0   : > { %7222 = vst [vmem:[#allocation107_spill] sm:$0xff] %v6435_v22  ;;  %4431 = vmatprep.mubr.f32.mxu1 %v1022_v1  ;;  %v6447_v44 = vsub.f32 %v417_v62, %v6435_v22  ;;  %v1100_v1 = vand.u32 4294901760, %v6439_v51  ;;  %v1082_v7 = vand.u32 4294901760, %v1081_v48 }
  0xb1   : > { %4765 = vmatmul.mubr.f32.gmra.mrb[50].mxu0 %v1010_v28  ;;  %v1052_v28 = vand.u32 4294901760, %v1051_v9  ;;  %v6454_v9 = vsub.f32 %v420_v36, %v6441_v2 }
  0xb2   : > { %4767 = vmatprep.mubr.f32.mxu0 %v1020_v17  ;;  %7225 = vst [vmem:[#allocation110_spill] sm:$0xff] %v6447_v44  ;;  %v6449_v17 = vand.u32 4294901760, %v423_v8  ;;  %v1110_v62 = vand.u32 4294901760, %v6447_v44 }
  0xb3   : > { %4432 = vmatmul.mubr.f32.gmra.mrb[52].mxu1 %v1032_v6  ;;  %7227 = vst [vmem:[#allocation112_spill] sm:$0xff] %v6454_v9  ;;  %v1072_v6 = vand.u32 4294901760, %v1071_v54 }
  0xb4   : > { %7226 = vst [vmem:[#allocation111_spill] sm:$0xff] %v6449_v17  ;;  %4434 = vmatprep.mubr.f32.mxu1 %v1042_v57  ;;  %v6459_v18 = vsub.f32 %v423_v8, %v6449_v17  ;;  %v1120_v57 = vand.u32 4294901760, %v6454_v9 }
  0xb5   : > { %4768 = vmatmul.mubr.f32.gmra.mrb[52].mxu0 %v1030_v13  ;;  %v1091_v13 = vsub.f32 %v6433_v56, %v1090_v34  ;;  %v7260_v56 = vld [vmem:[#allocation91_spill] sm:$0xff] }
  0xb6   : > { %4770 = vmatprep.mubr.f32.mxu0 %v1040_v5  ;;  %7228 = vst [vmem:[#allocation113_spill] sm:$0xff] %v6459_v18  ;;  %v1101_v5 = vsub.f32 %v6439_v51, %v1100_v1  ;;  %v1121_v8 = vsub.f32 %v6454_v9, %v1120_v57  ;;  %v7257_v9 = vld [vmem:[#allocation83_spill] sm:$0xff]  ;;  %v7259_v51 = vld [vmem:[#allocation89_spill] sm:$0xff] }
  0xb7   : > { %4435 = vmatmul.mubr.f32.gmra.mrb[54].mxu1 %v1052_v28  ;;  %v1092_v36 = vand.u32 4294901760, %v1091_v13  ;;  %v1130_v28 = vand.u32 4294901760, %v6459_v18  ;;  %v7241_v13 = vld [vmem:[#allocation49_spill] sm:$0xff] }
  0xb8   : > { %4437 = vmatprep.mubr.f32.mxu1 %v1062_v45  ;;  %v1102_v54 = vand.u32 4294901760, %v1101_v5  ;;  %v1122_v48 = vand.u32 4294901760, %v1121_v8  ;;  %v7244_v5 = vld [vmem:[#allocation55_spill] sm:$0xff]  ;;  %v7250_v8 = vld [vmem:[#allocation68_spill] sm:$0xff] }
  0xb9   : > { %4771 = vmatmul.mubr.f32.gmra.mrb[54].mxu0 %v1050_v16  ;;  %v1111_v16 = vsub.f32 %v6447_v44, %v1110_v62  ;;  %v1131_v45 = vsub.f32 %v6459_v18, %v1130_v28  ;;  %v7256_v18 = vld [vmem:[#allocation81_spill] sm:$0xff] }
  0xba   : > { %4773 = vmatprep.mubr.f32.mxu0 %v1060_v12  ;;  %v7258_v44 = vld [vmem:[#allocation85_spill] sm:$0xff] }
  0xbb   : > { %4438 = vmatmul.mubr.f32.gmra.mrb[56].mxu1 %v1072_v6  ;;  %v1112_v12 = vand.u32 4294901760, %v1111_v16  ;;  %v7240_v6 = vld [vmem:[#allocation48_spill] sm:$0xff]  ;;  %v7247_v16 = vld [vmem:[#allocation61_spill] sm:$0xff] }
  0xbc   : > { %4440 = vmatprep.mubr.f32.mxu1 %v1082_v7  ;;  %v7243_v7 = vld [vmem:[#allocation53_spill] sm:$0xff] }
  0xbd   : > { %4774 = vmatmul.mubr.f32.gmra.mrb[56].mxu0 %v1070_v19  ;;  %v1132_v19 = vand.u32 4294901760, %v1131_v45  ;;  %v7252_v45 = vld [vmem:[#allocation71_spill] sm:$0xff] }
  0xbe   : > { %4776 = vmatprep.mubr.f32.mxu0 %v1080_v20  ;;  %v5045_v20 = vpack.c.bf16 %v5915_v33, %v5909_v11  ;;  %v7233_v11 = vld [vmem:[#allocation33_spill] sm:$0xff]  ;;  %v7234_v33 = vld [vmem:[#allocation34_spill] sm:$0xff] }
  0xbf   : > { %4441 = vmatmul.mubr.f32.gmra.mrb[58].mxu1 %v1092_v36  ;;  %v7246_v36 = vld [vmem:[#allocation60_spill] sm:$0xff] }
  0xc0   : > { %4443 = vmatprep.mubr.f32.mxu1 %v1102_v54  ;;  %v7249_v54 = vld [vmem:[#allocation63_spill] sm:$0xff] }
  0xc1   : > { %4777 = vmatmul.mubr.f32.gmra.mrb[58].mxu0 %v1090_v34  ;;  %v7238_v34 = vld [vmem:[#allocation43_spill] sm:$0xff] }
  0xc2   : > { %4779 = vmatprep.mubr.f32.mxu0 %v1100_v1  ;;  %v7239_v1 = vld [vmem:[#allocation45_spill] sm:$0xff] }
  0xc3   : > { %4444 = vmatmul.mubr.f32.gmra.mrb[60].mxu1 %v1112_v12  ;;  %v7251_v12 = vld [vmem:[#allocation69_spill] sm:$0xff] }
  0xc4   : > { %4446 = vmatprep.mubr.f32.mxu1 %v1122_v48  ;;  %v7253_v48 = vld [vmem:[#allocation73_spill] sm:$0xff] }
  0xc5   : > { %4780 = vmatmul.mubr.f32.gmra.mrb[60].mxu0 %v1110_v62  ;;  %v7242_v62 = vld [vmem:[#allocation50_spill] sm:$0xff] }
  0xc6   : > { %4782 = vmatprep.mubr.f32.mxu0 %v1120_v57  ;;  %v7245_v57 = vld [vmem:[#allocation56_spill] sm:$0xff] }
  0xc7   : > { %4447 = vmatmul.mubr.f32.gmra.mrb[62].mxu1 %v1132_v19  ;;  %v7254_v19 = vld [vmem:[#allocation75_spill] sm:$0xff] }
  0xc8   : > { %4465 = vmatprep.mubr.f32.mxu1 %v5716_v23 }
  0xc9   : > { %4783 = vmatmul.mubr.f32.gmra.mrb[62].mxu0 %v1130_v28  ;;  %v7248_v28 = vld [vmem:[#allocation62_spill] sm:$0xff] }
  0xca   : > { %4801 = vmatprep.mubr.f32.mxu0 %v5716_v23 }
  0xcb   : > { %4466 = vmatmul.mubr.f32.vlgmr.msra.gmra.mrb[0].mxu1 %v5728_v27 }
  0xcc   : > { %5044 = vmatpush3.bf16.msra.mxu1 %v6356_v55  ;;  %4468 = vmatprep.mubr.f32.mxu1 %v5750_v38  ;;  %v7235_v55 = vld [vmem:[#allocation35_spill] sm:$0xff] }
  0xcd   : > { %4802 = vmatmul.mubr.f32.vlgmr.msra.gmra.mrb[0].mxu0 %v5728_v27  ;;  %5046 = vmatprep.subr.bf16.mxu1 %v5045_v20 }
  0xce   : > { %5092 = vmatpush3.bf16.msra.mxu0 %v5702_v15  ;;  %4804 = vmatprep.mubr.f32.mxu0 %v5750_v38  ;;  %v7229_v15 = vld [vmem:[#allocation25_spill] sm:$0xff] }
  0xcf   : > { %5094 = vmatprep.subr.bf16.mxu0 %v5713_v21  ;;  %4469 = vmatmul.mubr.f32.gmra.mrb[2].mxu1 %v5753_v40 }
  0xd0   : > { %4471 = vmatprep.mubr.f32.mxu1 %v5755_v41  ;;  %5048 = vmatpush3.bf16.msra.mxu1 %v5045_v20  ;;  %v7255_v20 = vld [vmem:[#allocation76_spill] sm:$0xff] }
  0xd1   : > { %4805 = vmatmul.mubr.f32.gmra.mrb[2].mxu0 %v5753_v40  ;;  %5050 = vmatprep.subr.bf16.mxu1 %v6367_v3 }
  0xd2   : > { %4807 = vmatprep.mubr.f32.mxu0 %v5755_v41  ;;  %5096 = vmatpush3.bf16.msra.mxu0 %v5713_v21  ;;  %v7230_v21 = vld [vmem:[#allocation27_spill] sm:$0xff] }
  0xd3   : > { %5098 = vmatprep.subr.bf16.mxu0 %v5726_v26  ;;  %4472 = vmatmul.mubr.f32.gmra.mrb[4].mxu1 %v5776_v50 }
  0xd4   : > { %4474 = vmatprep.mubr.f32.mxu1 %v5803_v14  ;;  %5052 = vmatpush3.bf16.msra.mxu1 %v6367_v3  ;;  %v7236_v3 = vld [vmem:[#allocation39_spill] sm:$0xff] }
  0xd5   : > { %4808 = vmatmul.mubr.f32.gmra.mrb[4].mxu0 %v5776_v50  ;;  %5054 = vmatprep.subr.bf16.mxu1 %v6419_v49 }
  0xd6   : > { %4810 = vmatprep.mubr.f32.mxu0 %v5803_v14  ;;  %5100 = vmatpush3.bf16.msra.mxu0 %v5726_v26  ;;  %v7231_v26 = vld [vmem:[#allocation28_spill] sm:$0xff] }
  0xd7   : > { %5102 = vmatprep.subr.bf16.mxu0 %v5762_v43  ;;  %4475 = vmatmul.mubr.f32.gmra.mrb[6].mxu1 %v5819_v37 }
  0xd8   : > { %4477 = vmatprep.mubr.f32.mxu1 %v5821_v39  ;;  %5056 = vmatpush3.bf16.msra.mxu1 %v6419_v49  ;;  %v7237_v49 = vld [vmem:[#allocation41_spill] sm:$0xff] }
  0xd9   : > { %4811 = vmatmul.mubr.f32.gmra.mrb[6].mxu0 %v5819_v37 }
  0xda   : > { %4813 = vmatprep.mubr.f32.mxu0 %v5821_v39  ;;  %5104 = vmatpush3.bf16.msra.mxu0 %v5762_v43  ;;  %v7232_v43 = vld [vmem:[#allocation30_spill] sm:$0xff] }
  0xdb   : > { %4478 = vmatmul.mubr.f32.gmra.mrb[8].mxu1 %v5823_v42 }
  0xdc   : > { %4480 = vmatprep.mubr.f32.mxu1 %v5841_v61 }
  0xdd   : > { %4814 = vmatmul.mubr.f32.gmra.mrb[8].mxu0 %v5823_v42 }
  0xde   : > { %4816 = vmatprep.mubr.f32.mxu0 %v5841_v61 }
  0xdf   : > { %4481 = vmatmul.mubr.f32.gmra.mrb[10].mxu1 %v5846_v0 }
  0xe0   : > { %4483 = vmatprep.mubr.f32.mxu1 %v5863_v32 }
  0xe1   : > { %4817 = vmatmul.mubr.f32.gmra.mrb[10].mxu0 %v5846_v0 }
  0xe2   : > { %4819 = vmatprep.mubr.f32.mxu0 %v5863_v32 }
  0xe3   : > { %4484 = vmatmul.mubr.f32.gmra.mrb[12].mxu1 %v5866_v52 }
  0xe4   : > { %4486 = vmatprep.mubr.f32.mxu1 %v5885_v47 }
  0xe5   : > { %4820 = vmatmul.mubr.f32.gmra.mrb[12].mxu0 %v5866_v52 }
  0xe6   : > { %4822 = vmatprep.mubr.f32.mxu0 %v5885_v47 }
  0xe7   : > { %4487 = vmatmul.mubr.f32.gmra.mrb[14].mxu1 %v5902_v46 }
  0xe8   : > { %4489 = vmatprep.mubr.f32.mxu1 %v5904_v4 }
  0xe9   : > { %4823 = vmatmul.mubr.f32.gmra.mrb[14].mxu0 %v5902_v46 }
  0xea   : > { %4825 = vmatprep.mubr.f32.mxu0 %v5904_v4 }
  0xeb   : > { %4490 = vmatmul.mubr.f32.gmra.mrb[16].mxu1 %v5926_v10 }
  0xec   : > { %4492 = vmatprep.mubr.f32.mxu1 %v7229_v15 }
  0xed   : > { %4826 = vmatmul.mubr.f32.gmra.mrb[16].mxu0 %v5926_v10 }
  0xee   : > { %4828 = vmatprep.mubr.f32.mxu0 %v7229_v15 }
  0xef   : > { %4493 = vmatmul.mubr.f32.gmra.mrb[18].mxu1 %v7230_v21 }
  0xf0   : > { %4495 = vmatprep.mubr.f32.mxu1 %v7231_v26 }
  0xf1   : > { %4829 = vmatmul.mubr.f32.gmra.mrb[18].mxu0 %v7230_v21 }
  0xf2   : > { %4831 = vmatprep.mubr.f32.mxu0 %v7231_v26 }
  0xf3   : > { %4496 = vmatmul.mubr.f32.gmra.mrb[20].mxu1 %v7232_v43 }
  0xf4   : > { %4498 = vmatprep.mubr.f32.mxu1 %v7233_v11 }
  0xf5   : > { %4832 = vmatmul.mubr.f32.gmra.mrb[20].mxu0 %v7232_v43 }
  0xf6   : > { %4834 = vmatprep.mubr.f32.mxu0 %v7233_v11 }
  0xf7   : > { %4499 = vmatmul.mubr.f32.gmra.mrb[22].mxu1 %v7234_v33 }
  0xf8   : > { %4501 = vmatprep.mubr.f32.mxu1 %v7235_v55 }
  0xf9   : > { %4835 = vmatmul.mubr.f32.gmra.mrb[22].mxu0 %v7234_v33 }
  0xfa   : > { %4837 = vmatprep.mubr.f32.mxu0 %v7235_v55 }
  0xfb   : > { %4502 = vmatmul.mubr.f32.gmra.mrb[24].mxu1 %v7236_v3 }
  0xfc   : > { %4504 = vmatprep.mubr.f32.mxu1 %v7237_v49 }
  0xfd   : > { %4838 = vmatmul.mubr.f32.gmra.mrb[24].mxu0 %v7236_v3 }
  0xfe   : > { %4840 = vmatprep.mubr.f32.mxu0 %v7237_v49 }
  0xff   : > { %4505 = vmatmul.mubr.f32.gmra.mrb[26].mxu1 %v7238_v34 }
 0x100   : > { %4507 = vmatprep.mubr.f32.mxu1 %v7239_v1 }
 0x101   : > { %4841 = vmatmul.mubr.f32.gmra.mrb[26].mxu0 %v7238_v34 }
 0x102   : > { %4843 = vmatprep.mubr.f32.mxu0 %v7239_v1 }
 0x103   : > { %4508 = vmatmul.mubr.f32.gmra.mrb[28].mxu1 %v7240_v6 }
 0x104   : > { %4510 = vmatprep.mubr.f32.mxu1 %v7241_v13 }
 0x105   : > { %4844 = vmatmul.mubr.f32.gmra.mrb[28].mxu0 %v7240_v6 }
 0x106   : > { %4846 = vmatprep.mubr.f32.mxu0 %v7241_v13 }
 0x107   : > { %4511 = vmatmul.mubr.f32.gmra.mrb[30].mxu1 %v7242_v62 }
 0x108   : > { %4513 = vmatprep.mubr.f32.mxu1 %v7243_v7 }
 0x109   : > { %4847 = vmatmul.mubr.f32.gmra.mrb[30].mxu0 %v7242_v62 }
 0x10a   : > { %4849 = vmatprep.mubr.f32.mxu0 %v7243_v7 }
 0x10b   : > { %4514 = vmatmul.mubr.f32.gmra.mrb[32].mxu1 %v7244_v5 }
 0x10c   : > { %4516 = vmatprep.mubr.f32.mxu1 %v7245_v57 }
 0x10d   : > { %4850 = vmatmul.mubr.f32.gmra.mrb[32].mxu0 %v7244_v5 }
 0x10e   : > { %4852 = vmatprep.mubr.f32.mxu0 %v7245_v57 }
 0x10f   : > { %4517 = vmatmul.mubr.f32.gmra.mrb[34].mxu1 %v7246_v36 }
 0x110   : > { %4519 = vmatprep.mubr.f32.mxu1 %v7247_v16 }
 0x111   : > { %4853 = vmatmul.mubr.f32.gmra.mrb[34].mxu0 %v7246_v36 }
 0x112   : > { %4855 = vmatprep.mubr.f32.mxu0 %v7247_v16 }
 0x113   : > { %4520 = vmatmul.mubr.f32.gmra.mrb[36].mxu1 %v7248_v28 }
 0x114   : > { %4522 = vmatprep.mubr.f32.mxu1 %v7249_v54 }
 0x115   : > { %4856 = vmatmul.mubr.f32.gmra.mrb[36].mxu0 %v7248_v28 }
 0x116   : > { %4858 = vmatprep.mubr.f32.mxu0 %v7249_v54 }
 0x117   : > { %4523 = vmatmul.mubr.f32.gmra.mrb[38].mxu1 %v7250_v8 }
 0x118   : > { %4525 = vmatprep.mubr.f32.mxu1 %v7251_v12 }
 0x119   : > { %4859 = vmatmul.mubr.f32.gmra.mrb[38].mxu0 %v7250_v8 }
 0x11a   : > { %4861 = vmatprep.mubr.f32.mxu0 %v7251_v12 }
 0x11b   : > { %4526 = vmatmul.mubr.f32.gmra.mrb[40].mxu1 %v7252_v45 }
 0x11c   : > { %4528 = vmatprep.mubr.f32.mxu1 %v7253_v48 }
 0x11d   : > { %4862 = vmatmul.mubr.f32.gmra.mrb[40].mxu0 %v7252_v45 }
 0x11e   : > { %4864 = vmatprep.mubr.f32.mxu0 %v7253_v48 }
 0x11f   : > { %4529 = vmatmul.mubr.f32.gmra.mrb[42].mxu1 %v7254_v19 }
 0x120   : > { %4531 = vmatprep.mubr.f32.mxu1 %v7255_v20 }
 0x121   : > { %4865 = vmatmul.mubr.f32.gmra.mrb[42].mxu0 %v7254_v19 }
 0x122   : > { %4867 = vmatprep.mubr.f32.mxu0 %v7255_v20 }
 0x123   : > { %4532 = vmatmul.mubr.f32.gmra.mrb[44].mxu1 %v6255_v24 }
 0x124   : > { %4534 = vmatprep.mubr.f32.mxu1 %v6266_v58 }
 0x125   : > { %4868 = vmatmul.mubr.f32.gmra.mrb[44].mxu0 %v6255_v24 }
 0x126   : > { %4870 = vmatprep.mubr.f32.mxu0 %v6266_v58 }
 0x127   : > { %4535 = vmatmul.mubr.f32.gmra.mrb[46].mxu1 %v7256_v18 }
 0x128   : > { %4537 = vmatprep.mubr.f32.mxu1 %v7257_v9 }
 0x129   : > { %4871 = vmatmul.mubr.f32.gmra.mrb[46].mxu0 %v7256_v18 }
 0x12a   : > { %4873 = vmatprep.mubr.f32.mxu0 %v7257_v9 }
 0x12b   : > { %4538 = vmatmul.mubr.f32.gmra.mrb[48].mxu1 %v7258_v44 }
 0x12c   : > { %4540 = vmatprep.mubr.f32.mxu1 %v6316_v30 }
 0x12d   : > { %4874 = vmatmul.mubr.f32.gmra.mrb[48].mxu0 %v7258_v44 }
 0x12e   : > { %4876 = vmatprep.mubr.f32.mxu0 %v6316_v30 }
 0x12f   : > { %4541 = vmatmul.mubr.f32.gmra.mrb[50].mxu1 %v6328_v31 }
 0x130   : > { %4543 = vmatprep.mubr.f32.mxu1 %v7259_v51 }
 0x131   : > { %4877 = vmatmul.mubr.f32.gmra.mrb[50].mxu0 %v6328_v31 }
 0x132   : > { %4879 = vmatprep.mubr.f32.mxu0 %v7259_v51 }
 0x133   : > { %4544 = vmatmul.mubr.f32.gmra.mrb[52].mxu1 %v7260_v56 }
 0x134   : > { %4546 = vmatprep.mubr.f32.mxu1 %v7261_v29 }
 0x135   : > { %4880 = vmatmul.mubr.f32.gmra.mrb[52].mxu0 %v7260_v56 }
 0x136   : > { %4882 = vmatprep.mubr.f32.mxu0 %v7261_v29 }
 0x137   : > { %4547 = vmatmul.mubr.f32.gmra.mrb[54].mxu1 %v7262_v53 }
 0x138   : > { %4549 = vmatprep.mubr.f32.mxu1 %v7263_v59 }
 0x139   : > { %4883 = vmatmul.mubr.f32.gmra.mrb[54].mxu0 %v7262_v53 }
 0x13a   : > { %4885 = vmatprep.mubr.f32.mxu0 %v7263_v59 }
 0x13b   : > { %4550 = vmatmul.mubr.f32.gmra.mrb[56].mxu1 %v7264_v25 }
 0x13c   : > { %4552 = vmatprep.mubr.f32.mxu1 %v6402_v60 }
 0x13d   : > { %4886 = vmatmul.mubr.f32.gmra.mrb[56].mxu0 %v7264_v25 }
 0x13e   : > { %4888 = vmatprep.mubr.f32.mxu0 %v6402_v60  ;;  %v7265_v60 = vld [vmem:[#allocation8_spill] sm:$0xff] }
 0x13f   : > { %4553 = vmatmul.mubr.f32.gmra.mrb[58].mxu1 %v6415_v63 }
 0x140   : > { %4555 = vmatprep.mubr.f32.mxu1 %v6424_v35 }
 0x141   : > { %4889 = vmatmul.mubr.f32.gmra.mrb[58].mxu0 %v6415_v63  ;;  %v7266_v63 = vld [vmem:[#allocation9_spill] sm:$0xff] }
 0x142   : > { %4891 = vmatprep.mubr.f32.mxu0 %v6424_v35  ;;  %v7267_v35 = vld [vmem:[#allocation10_spill] sm:$0xff] }
 0x143   : > { %4556 = vmatmul.mubr.f32.gmra.mrb[60].mxu1 %v6435_v22 }
 0x144   : > { %4558 = vmatprep.mubr.f32.mxu1 %v6441_v2 }
 0x145   : > { %4892 = vmatmul.mubr.f32.gmra.mrb[60].mxu0 %v6435_v22  ;;  %v7268_v22 = vld [vmem:[#allocation11_spill] sm:$0xff] }
 0x146   : > { %4894 = vmatprep.mubr.f32.mxu0 %v6441_v2  ;;  %v7269_v2 = vld [vmem:[#allocation12_spill] sm:$0xff] }
 0x147   : > { %4559 = vmatmul.mubr.f32.gmra.mrb[62].mxu1 %v6449_v17 }
 0x148   : > { %4577 = vmatprep.mubr.f32.mxu1 %v7265_v60  ;;  %v7289_v60 = vld [vmem:[#allocation40_spill] sm:$0xff] }
 0x149   : > { %4895 = vmatmul.mubr.f32.gmra.mrb[62].mxu0 %v6449_v17  ;;  %v7270_v17 = vld [vmem:[#allocation13_spill] sm:$0xff] }
 0x14a   : > { %4913 = vmatprep.mubr.f32.mxu0 %v5716_v23  ;;  %v7271_v23 = vld [vmem:[#allocation14_spill] sm:$0xff] }
 0x14b   : > { %4578 = vmatmul.mubr.f32.vlgmr.msra.gmra.mrb[0].mxu1 %v7266_v63  ;;  %v7291_v63 = vld [vmem:[#allocation44_spill] sm:$0xff] }
 0x14c   : > { %4580 = vmatprep.mubr.f32.mxu1 %v7267_v35  ;;  %v7290_v35 = vld [vmem:[#allocation42_spill] sm:$0xff] }
 0x14d   : > { %4914 = vmatmul.mubr.f32.vlgmr.msra.gmra.mrb[0].mxu0 %v5728_v27  ;;  %v7272_v27 = vld [vmem:[#allocation15_spill] sm:$0xff] }
 0x14e   : > { %4916 = vmatprep.mubr.f32.mxu0 %v5750_v38  ;;  %v7273_v38 = vld [vmem:[#allocation16_spill] sm:$0xff] }
 0x14f   : > { %4581 = vmatmul.mubr.f32.gmra.mrb[2].mxu1 %v7268_v22  ;;  %v7292_v22 = vld [vmem:[#allocation46_spill] sm:$0xff] }
 0x150   : > { %4583 = vmatprep.mubr.f32.mxu1 %v7269_v2  ;;  %v7293_v2 = vld [vmem:[#allocation47_spill] sm:$0xff] }
 0x151   : > { %4917 = vmatmul.mubr.f32.gmra.mrb[2].mxu0 %v5753_v40  ;;  %v7274_v40 = vld [vmem:[#allocation17_spill] sm:$0xff] }
 0x152   : > { %4919 = vmatprep.mubr.f32.mxu0 %v5755_v41  ;;  %v7275_v41 = vld [vmem:[#allocation18_spill] sm:$0xff] }
 0x153   : > { %4584 = vmatmul.mubr.f32.gmra.mrb[4].mxu1 %v7270_v17  ;;  %v7294_v17 = vld [vmem:[#allocation51_spill] sm:$0xff] }
 0x154   : > { %4586 = vmatprep.mubr.f32.mxu1 %v7271_v23 }
 0x155   : > { %4920 = vmatmul.mubr.f32.gmra.mrb[4].mxu0 %v5776_v50  ;;  %v7276_v50 = vld [vmem:[#allocation19_spill] sm:$0xff] }
 0x156   : > { %4922 = vmatprep.mubr.f32.mxu0 %v5803_v14  ;;  %v7277_v14 = vld [vmem:[#allocation20_spill] sm:$0xff] }
 0x157   : > { %4587 = vmatmul.mubr.f32.gmra.mrb[6].mxu1 %v7272_v27 }
 0x158   : > { %4589 = vmatprep.mubr.f32.mxu1 %v7273_v38 }
 0x159   : > { %4923 = vmatmul.mubr.f32.gmra.mrb[6].mxu0 %v5819_v37  ;;  %v7278_v37 = vld [vmem:[#allocation21_spill] sm:$0xff] }
 0x15a   : > { %4925 = vmatprep.mubr.f32.mxu0 %v5821_v39  ;;  %v7279_v39 = vld [vmem:[#allocation22_spill] sm:$0xff] }
 0x15b   : > { %4590 = vmatmul.mubr.f32.gmra.mrb[8].mxu1 %v7274_v40 }
 0x15c   : > { %4592 = vmatprep.mubr.f32.mxu1 %v7275_v41 }
 0x15d   : > { %4926 = vmatmul.mubr.f32.gmra.mrb[8].mxu0 %v5823_v42  ;;  %v7280_v42 = vld [vmem:[#allocation23_spill] sm:$0xff] }
 0x15e   : > { %4928 = vmatprep.mubr.f32.mxu0 %v5841_v61  ;;  %v7281_v61 = vld [vmem:[#allocation24_spill] sm:$0xff] }
 0x15f   : > { %4593 = vmatmul.mubr.f32.gmra.mrb[10].mxu1 %v7276_v50 }
 0x160   : > { %4595 = vmatprep.mubr.f32.mxu1 %v7277_v14 }
 0x161   : > { %4929 = vmatmul.mubr.f32.gmra.mrb[10].mxu0 %v5846_v0  ;;  %v7282_v0 = vld [vmem:[#allocation26_spill] sm:$0xff] }
 0x162   : > { %4931 = vmatprep.mubr.f32.mxu0 %v5863_v32  ;;  %v7283_v32 = vld [vmem:[#allocation29_spill] sm:$0xff] }
 0x163   : > { %4596 = vmatmul.mubr.f32.gmra.mrb[12].mxu1 %v7278_v37 }
 0x164   : > { %4598 = vmatprep.mubr.f32.mxu1 %v7279_v39 }
 0x165   : > { %4932 = vmatmul.mubr.f32.gmra.mrb[12].mxu0 %v5866_v52  ;;  %v7284_v52 = vld [vmem:[#allocation31_spill] sm:$0xff] }
 0x166   : > { %4934 = vmatprep.mubr.f32.mxu0 %v5885_v47  ;;  %v7285_v47 = vld [vmem:[#allocation32_spill] sm:$0xff] }
 0x167   : > { %4599 = vmatmul.mubr.f32.gmra.mrb[14].mxu1 %v7280_v42 }
 0x168   : > { %4601 = vmatprep.mubr.f32.mxu1 %v7281_v61 }
 0x169   : > { %4935 = vmatmul.mubr.f32.gmra.mrb[14].mxu0 %v5902_v46  ;;  %v7286_v46 = vld [vmem:[#allocation36_spill] sm:$0xff] }
 0x16a   : > { %4937 = vmatprep.mubr.f32.mxu0 %v5904_v4  ;;  %v7287_v4 = vld [vmem:[#allocation37_spill] sm:$0xff] }
 0x16b   : > { %4602 = vmatmul.mubr.f32.gmra.mrb[16].mxu1 %v7282_v0 }
 0x16c   : > { %4604 = vmatprep.mubr.f32.mxu1 %v7283_v32 }
 0x16d   : > { %4938 = vmatmul.mubr.f32.gmra.mrb[16].mxu0 %v5926_v10  ;;  %v7288_v10 = vld [vmem:[#allocation38_spill] sm:$0xff] }
 0x16e   : > { %4940 = vmatprep.mubr.f32.mxu0 %v7229_v15  ;;  %v7295_v15 = vld [vmem:[#allocation52_spill] sm:$0xff] }
 0x16f   : > { %4605 = vmatmul.mubr.f32.gmra.mrb[18].mxu1 %v7284_v52 }
 0x170   : > { %4607 = vmatprep.mubr.f32.mxu1 %v7285_v47 }
 0x171   : > { %4941 = vmatmul.mubr.f32.gmra.mrb[18].mxu0 %v7230_v21  ;;  %v7296_v21 = vld [vmem:[#allocation54_spill] sm:$0xff] }
 0x172   : > { %4943 = vmatprep.mubr.f32.mxu0 %v7231_v26  ;;  %v7297_v26 = vld [vmem:[#allocation57_spill] sm:$0xff] }
 0x173   : > { %4608 = vmatmul.mubr.f32.gmra.mrb[20].mxu1 %v7286_v46 }
 0x174   : > { %4610 = vmatprep.mubr.f32.mxu1 %v7287_v4 }
 0x175   : > { %4944 = vmatmul.mubr.f32.gmra.mrb[20].mxu0 %v7232_v43  ;;  %v7298_v43 = vld [vmem:[#allocation58_spill] sm:$0xff] }
 0x176   : > { %4946 = vmatprep.mubr.f32.mxu0 %v7233_v11  ;;  %v7299_v11 = vld [vmem:[#allocation59_spill] sm:$0xff] }
 0x177   : > { %4611 = vmatmul.mubr.f32.gmra.mrb[22].mxu1 %v7288_v10 }
 0x178   : > { %4613 = vmatprep.mubr.f32.mxu1 %v7289_v60 }
 0x179   : > { %4947 = vmatmul.mubr.f32.gmra.mrb[22].mxu0 %v7234_v33  ;;  %v7300_v33 = vld [vmem:[#allocation64_spill] sm:$0xff] }
 0x17a   : > { %4949 = vmatprep.mubr.f32.mxu0 %v7235_v55  ;;  %v7301_v55 = vld [vmem:[#allocation65_spill] sm:$0xff] }
 0x17b   : > { %4614 = vmatmul.mubr.f32.gmra.mrb[24].mxu1 %v7290_v35 }
 0x17c   : > { %4616 = vmatprep.mubr.f32.mxu1 %v7291_v63 }
 0x17d   : > { %4950 = vmatmul.mubr.f32.gmra.mrb[24].mxu0 %v7236_v3  ;;  %v7302_v3 = vld [vmem:[#allocation66_spill] sm:$0xff] }
 0x17e   : > { %4952 = vmatprep.mubr.f32.mxu0 %v7237_v49  ;;  %v7303_v49 = vld [vmem:[#allocation67_spill] sm:$0xff] }
 0x17f   : > { %4617 = vmatmul.mubr.f32.gmra.mrb[26].mxu1 %v7292_v22 }
 0x180   : > { %4619 = vmatprep.mubr.f32.mxu1 %v7293_v2 }
 0x181   : > { %4953 = vmatmul.mubr.f32.gmra.mrb[26].mxu0 %v7238_v34  ;;  %v7304_v34 = vld [vmem:[#allocation70_spill] sm:$0xff] }
 0x182   : > { %4955 = vmatprep.mubr.f32.mxu0 %v7239_v1  ;;  %v7305_v1 = vld [vmem:[#allocation72_spill] sm:$0xff] }
 0x183   : > { %4620 = vmatmul.mubr.f32.gmra.mrb[28].mxu1 %v7294_v17 }
 0x184   : > { %4622 = vmatprep.mubr.f32.mxu1 %v7295_v15 }
 0x185   : > { %4956 = vmatmul.mubr.f32.gmra.mrb[28].mxu0 %v7240_v6  ;;  %v7306_v6 = vld [vmem:[#allocation74_spill] sm:$0xff] }
 0x186   : > { %4958 = vmatprep.mubr.f32.mxu0 %v7241_v13  ;;  %v7307_v13 = vld [vmem:[#allocation77_spill] sm:$0xff] }
 0x187   : > { %4623 = vmatmul.mubr.f32.gmra.mrb[30].mxu1 %v7296_v21 }
 0x188   : > { %4625 = vmatprep.mubr.f32.mxu1 %v7297_v26 }
 0x189   : > { %4959 = vmatmul.mubr.f32.gmra.mrb[30].mxu0 %v7242_v62  ;;  %v7308_v62 = vld [vmem:[#allocation78_spill] sm:$0xff] }
 0x18a   : > { %4961 = vmatprep.mubr.f32.mxu0 %v7243_v7  ;;  %v7309_v7 = vld [vmem:[#allocation79_spill] sm:$0xff] }
 0x18b   : > { %4626 = vmatmul.mubr.f32.gmra.mrb[32].mxu1 %v7298_v43 }
 0x18c   : > { %4628 = vmatprep.mubr.f32.mxu1 %v7299_v11 }
 0x18d   : > { %4962 = vmatmul.mubr.f32.gmra.mrb[32].mxu0 %v7244_v5  ;;  %v7310_v5 = vld [vmem:[#allocation80_spill] sm:$0xff] }
 0x18e   : > { %4964 = vmatprep.mubr.f32.mxu0 %v7245_v57  ;;  %v7311_v57 = vld [vmem:[#allocation82_spill] sm:$0xff] }
 0x18f   : > { %4629 = vmatmul.mubr.f32.gmra.mrb[34].mxu1 %v7300_v33 }
 0x190   : > { %4631 = vmatprep.mubr.f32.mxu1 %v7301_v55 }
 0x191   : > { %4965 = vmatmul.mubr.f32.gmra.mrb[34].mxu0 %v7246_v36  ;;  %v7312_v36 = vld [vmem:[#allocation84_spill] sm:$0xff] }
 0x192   : > { %4967 = vmatprep.mubr.f32.mxu0 %v7247_v16  ;;  %v7313_v16 = vld [vmem:[#allocation86_spill] sm:$0xff] }
 0x193   : > { %4632 = vmatmul.mubr.f32.gmra.mrb[36].mxu1 %v7302_v3 }
 0x194   : > { %4634 = vmatprep.mubr.f32.mxu1 %v7303_v49 }
 0x195   : > { %4968 = vmatmul.mubr.f32.gmra.mrb[36].mxu0 %v7248_v28  ;;  %v7314_v28 = vld [vmem:[#allocation87_spill] sm:$0xff] }
 0x196   : > { %4970 = vmatprep.mubr.f32.mxu0 %v7249_v54  ;;  %v7315_v54 = vld [vmem:[#allocation88_spill] sm:$0xff] }
 0x197   : > { %4635 = vmatmul.mubr.f32.gmra.mrb[38].mxu1 %v7304_v34 }
 0x198   : > { %4637 = vmatprep.mubr.f32.mxu1 %v7305_v1 }
 0x199   : > { %4971 = vmatmul.mubr.f32.gmra.mrb[38].mxu0 %v7250_v8  ;;  %v7325_v8 = vld [vmem:[#allocation106_spill] sm:$0xff] }
 0x19a   : > { %4973 = vmatprep.mubr.f32.mxu0 %v7251_v12  ;;  %v7327_v12 = vld [vmem:[#allocation108_spill] sm:$0xff] }
 0x19b   : > { %4638 = vmatmul.mubr.f32.gmra.mrb[40].mxu1 %v7306_v6 }
 0x19c   : > { %4640 = vmatprep.mubr.f32.mxu1 %v7307_v13 }
 0x19d   : > { %4974 = vmatmul.mubr.f32.gmra.mrb[40].mxu0 %v7252_v45  ;;  %v7329_v45 = vld [vmem:[#allocation110_spill] sm:$0xff] }
 0x19e   : > { %4976 = vmatprep.mubr.f32.mxu0 %v7253_v48  ;;  %v7331_v48 = vld [vmem:[#allocation112_spill] sm:$0xff] }
 0x19f   : > { %4641 = vmatmul.mubr.f32.gmra.mrb[42].mxu1 %v7308_v62 }
 0x1a0   : > { %4643 = vmatprep.mubr.f32.mxu1 %v7309_v7 }
 0x1a1   : > { %4977 = vmatmul.mubr.f32.gmra.mrb[42].mxu0 %v7254_v19  ;;  %v7332_v19 = vld [vmem:[#allocation109_spill] sm:$0xff] }
 0x1a2   : > { %4979 = vmatprep.mubr.f32.mxu0 %v7255_v20  ;;  %v7334_v20 = vld [vmem:[#allocation111_spill] sm:$0xff] }
 0x1a3   : > { %4644 = vmatmul.mubr.f32.gmra.mrb[44].mxu1 %v7310_v5 }
 0x1a4   : > { %4646 = vmatprep.mubr.f32.mxu1 %v7311_v57 }
 0x1a5   : > { %4980 = vmatmul.mubr.f32.gmra.mrb[44].mxu0 %v6255_v24  ;;  %v7316_v24 = vld [vmem:[#allocation90_spill] sm:$0xff] }
 0x1a6   : > { %4982 = vmatprep.mubr.f32.mxu0 %v6266_v58  ;;  %v7317_v58 = vld [vmem:[#allocation93_spill] sm:$0xff] }
 0x1a7   : > { %4647 = vmatmul.mubr.f32.gmra.mrb[46].mxu1 %v7312_v36 }
 0x1a8   : > { %4649 = vmatprep.mubr.f32.mxu1 %v7313_v16 }
 0x1a9   : > { %4983 = vmatmul.mubr.f32.gmra.mrb[46].mxu0 %v7256_v18  ;;  %v7318_v18 = vld [vmem:[#allocation94_spill] sm:$0xff] }
 0x1aa   : > { %4985 = vmatprep.mubr.f32.mxu0 %v7257_v9  ;;  %v7319_v9 = vld [vmem:[#allocation97_spill] sm:$0xff] }
 0x1ab   : > { %4650 = vmatmul.mubr.f32.gmra.mrb[48].mxu1 %v7314_v28 }
 0x1ac   : > { %4652 = vmatprep.mubr.f32.mxu1 %v7315_v54 }
 0x1ad   : > { %4986 = vmatmul.mubr.f32.gmra.mrb[48].mxu0 %v7258_v44  ;;  %v7320_v44 = vld [vmem:[#allocation98_spill] sm:$0xff] }
 0x1ae   : > { %4988 = vmatprep.mubr.f32.mxu0 %v6316_v30  ;;  %v7321_v30 = vld [vmem:[#allocation99_spill] sm:$0xff] }
 0x1af   : > { %4653 = vmatmul.mubr.f32.gmra.mrb[50].mxu1 %v7316_v24 }
 0x1b0   : > { %4655 = vmatprep.mubr.f32.mxu1 %v7317_v58 }
 0x1b1   : > { %4989 = vmatmul.mubr.f32.gmra.mrb[50].mxu0 %v6328_v31  ;;  %v7322_v31 = vld [vmem:[#allocation102_spill] sm:$0xff] }
 0x1b2   : > { %4991 = vmatprep.mubr.f32.mxu0 %v7259_v51  ;;  %v7323_v51 = vld [vmem:[#allocation104_spill] sm:$0xff] }
 0x1b3   : > { %4656 = vmatmul.mubr.f32.gmra.mrb[52].mxu1 %v7318_v18 }
 0x1b4   : > { %4658 = vmatprep.mubr.f32.mxu1 %v7319_v9 }
 0x1b5   : > { %4992 = vmatmul.mubr.f32.gmra.mrb[52].mxu0 %v7260_v56  ;;  %v7324_v56 = vld [vmem:[#allocation101_spill] sm:$0xff] }
 0x1b6   : > { %4994 = vmatprep.mubr.f32.mxu0 %v7261_v29  ;;  %v7326_v29 = vld [vmem:[#allocation103_spill] sm:$0xff] }
 0x1b7   : > { %4659 = vmatmul.mubr.f32.gmra.mrb[54].mxu1 %v7320_v44 }
 0x1b8   : > { %4661 = vmatprep.mubr.f32.mxu1 %v7321_v30 }
 0x1b9   : > { %4995 = vmatmul.mubr.f32.gmra.mrb[54].mxu0 %v7262_v53  ;;  %v7328_v53 = vld [vmem:[#allocation105_spill] sm:$0xff] }
 0x1ba   : > { %4997 = vmatprep.mubr.f32.mxu0 %v7263_v59  ;;  %v7330_v59 = vld [vmem:[#allocation107_spill] sm:$0xff] }
 0x1bb   : > { %4662 = vmatmul.mubr.f32.gmra.mrb[56].mxu1 %v7322_v31 }
 0x1bc   : > { %4664 = vmatprep.mubr.f32.mxu1 %v7323_v51 }
 0x1bd   : > { %4998 = vmatmul.mubr.f32.gmra.mrb[56].mxu0 %v7264_v25  ;;  %v7333_v25 = vld [vmem:[#allocation113_spill] sm:$0xff] }
 0x1be   : > { %5000 = vmatprep.mubr.f32.mxu0 %v7324_v56 }
 0x1bf   : > { %4665 = vmatmul.mubr.f32.gmra.mrb[58].mxu1 %v7325_v8 }
 0x1c0   : > { %4667 = vmatprep.mubr.f32.mxu1 %v7327_v12 }
 0x1c1   : > { %5001 = vmatmul.mubr.f32.gmra.mrb[58].mxu0 %v7326_v29 }
 0x1c2   : > { %5003 = vmatprep.mubr.f32.mxu0 %v7328_v53 }
 0x1c3   : > { %4668 = vmatmul.mubr.f32.gmra.mrb[60].mxu1 %v7329_v45 }
 0x1c4   : > { %4670 = vmatprep.mubr.f32.mxu1 %v7331_v48 }
 0x1c5   : > { %5004 = vmatmul.mubr.f32.gmra.mrb[60].mxu0 %v7330_v59 }
 0x1c6   : > { %5006 = vmatprep.mubr.f32.mxu0 %v7332_v19 }
 0x1c7   : > { %4671 = vmatmul.mubr.f32.gmra.mrb[62].mxu1 %v7333_v25 }
 0x1c9   : > { %5007 = vmatmul.mubr.f32.gmra.mrb[62].mxu0 %v7334_v20 }
 0x21e   : > { %v4579_v23 = vpop.f32.mrb[0].mxu1 }
 0x21f   : > { %v1711_v40 = vpop.f32.mrb[1].mxu1 }
 0x220   : > { %v4915_v27 = vpop.f32.mrb[0].mxu0 }
 0x221   : > { %v5105_v38 = vadd.f32 %v4915_v27, %v4579_v23  ;;  %v3289_v41 = vpop.f32.mrb[1].mxu0 }
 0x222   : > { %v5106_v50 = vadd.f32 %v3289_v41, %v1711_v40  ;;  %v4582_v14 = vpop.f32.mrb[2].mxu1 }
 0x223   : > { %3672 = vst [vmem:[%s6740_s25 + $0x10] sm:$0xff] %v5105_v38  ;;  %3736 = vst [vmem:[%s6740_s25 + $0x18] sm:$0xff] %v5105_v38  ;;  %v1725_v42 = vpop.f32.mrb[3].mxu1 }
 0x224   : > { %3671 = vst [vmem:[%s6740_s25] sm:$0xff] %v5106_v50  ;;  %3735 = vst [vmem:[%s6740_s25 + $0x8] sm:$0xff] %v5106_v50  ;;  %v4918_v37 = vpop.f32.mrb[2].mxu0 }
 0x225   : > { %v5107_v39 = vadd.f32 %v4918_v37, %v4582_v14  ;;  %v3301_v61 = vpop.f32.mrb[3].mxu0 }
 0x226   : > { %v5108_v0 = vadd.f32 %v3301_v61, %v1725_v42  ;;  %v4585_v32 = vpop.f32.mrb[4].mxu1 }
 0x227   : > { %3674 = vst [vmem:[%s6740_s25 + $0x30] sm:$0xff] %v5107_v39  ;;  %3738 = vst [vmem:[%s6740_s25 + $0x38] sm:$0xff] %v5107_v39  ;;  %v1739_v46 = vpop.f32.mrb[5].mxu1 }
 0x228   : > { %3673 = vst [vmem:[%s6740_s25 + $0x20] sm:$0xff] %v5108_v0  ;;  %3737 = vst [vmem:[%s6740_s25 + $0x28] sm:$0xff] %v5108_v0  ;;  %v4921_v52 = vpop.f32.mrb[4].mxu0 }
 0x229   : > { %v5109_v47 = vadd.f32 %v4921_v52, %v4585_v32  ;;  %v3313_v4 = vpop.f32.mrb[5].mxu0 }
 0x22a   : > { %v5110_v10 = vadd.f32 %v3313_v4, %v1739_v46  ;;  %v4588_v60 = vpop.f32.mrb[6].mxu1 }
 0x22b   : > { %3676 = vst [vmem:[%s6740_s25 + $0x50] sm:$0xff] %v5109_v47  ;;  %3740 = vst [vmem:[%s6740_s25 + $0x58] sm:$0xff] %v5109_v47  ;;  %v1753_v22 = vpop.f32.mrb[7].mxu1 }
 0x22c   : > { %3675 = vst [vmem:[%s6740_s25 + $0x40] sm:$0xff] %v5110_v10  ;;  %3739 = vst [vmem:[%s6740_s25 + $0x48] sm:$0xff] %v5110_v10  ;;  %v4924_v35 = vpop.f32.mrb[6].mxu0 }
 0x22d   : > { %v5111_v63 = vadd.f32 %v4924_v35, %v4588_v60  ;;  %v3325_v2 = vpop.f32.mrb[7].mxu0 }
 0x22e   : > { %v5112_v17 = vadd.f32 %v3325_v2, %v1753_v22  ;;  %v4591_v15 = vpop.f32.mrb[8].mxu1 }
 0x22f   : > { %3678 = vst [vmem:[%s6740_s25 + $0x70] sm:$0xff] %v5111_v63  ;;  %3742 = vst [vmem:[%s6740_s25 + $0x78] sm:$0xff] %v5111_v63  ;;  %v1767_v43 = vpop.f32.mrb[9].mxu1 }
 0x230   : > { %3677 = vst [vmem:[%s6740_s25 + $0x60] sm:$0xff] %v5112_v17  ;;  %3741 = vst [vmem:[%s6740_s25 + $0x68] sm:$0xff] %v5112_v17  ;;  %v4927_v21 = vpop.f32.mrb[8].mxu0 }
 0x231   : > { %v5113_v26 = vadd.f32 %v4927_v21, %v4591_v15  ;;  %v3337_v11 = vpop.f32.mrb[9].mxu0 }
 0x232   : > { %v5114_v33 = vadd.f32 %v3337_v11, %v1767_v43  ;;  %v4594_v55 = vpop.f32.mrb[10].mxu1 }
 0x233   : > { %3680 = vst [vmem:[%s6740_s25 + $0x90] sm:$0xff] %v5113_v26  ;;  %3744 = vst [vmem:[%s6740_s25 + $0x98] sm:$0xff] %v5113_v26  ;;  %v1781_v34 = vpop.f32.mrb[11].mxu1 }
 0x234   : > { %3679 = vst [vmem:[%s6740_s25 + $0x80] sm:$0xff] %v5114_v33  ;;  %3743 = vst [vmem:[%s6740_s25 + $0x88] sm:$0xff] %v5114_v33  ;;  %v4930_v3 = vpop.f32.mrb[10].mxu0 }
 0x235   : > { %v5115_v49 = vadd.f32 %v4930_v3, %v4594_v55  ;;  %v3349_v1 = vpop.f32.mrb[11].mxu0 }
 0x236   : > { %v5116_v6 = vadd.f32 %v3349_v1, %v1781_v34  ;;  %v4597_v13 = vpop.f32.mrb[12].mxu1 }
 0x237   : > { %3682 = vst [vmem:[%s6740_s25 + $0xb0] sm:$0xff] %v5115_v49  ;;  %3746 = vst [vmem:[%s6740_s25 + $0xb8] sm:$0xff] %v5115_v49  ;;  %v1795_v5 = vpop.f32.mrb[13].mxu1 }
 0x238   : > { %3681 = vst [vmem:[%s6740_s25 + $0xa0] sm:$0xff] %v5116_v6  ;;  %3745 = vst [vmem:[%s6740_s25 + $0xa8] sm:$0xff] %v5116_v6  ;;  %v4933_v62 = vpop.f32.mrb[12].mxu0 }
 0x239   : > { %v5117_v7 = vadd.f32 %v4933_v62, %v4597_v13  ;;  %v3361_v57 = vpop.f32.mrb[13].mxu0 }
 0x23a   : > { %v5118_v36 = vadd.f32 %v3361_v57, %v1795_v5  ;;  %v4600_v16 = vpop.f32.mrb[14].mxu1 }
 0x23b   : > { %3684 = vst [vmem:[%s6740_s25 + $0xd0] sm:$0xff] %v5117_v7  ;;  %3748 = vst [vmem:[%s6740_s25 + $0xd8] sm:$0xff] %v5117_v7  ;;  %v1809_v24 = vpop.f32.mrb[15].mxu1 }
 0x23c   : > { %3683 = vst [vmem:[%s6740_s25 + $0xc0] sm:$0xff] %v5118_v36  ;;  %3747 = vst [vmem:[%s6740_s25 + $0xc8] sm:$0xff] %v5118_v36  ;;  %v4936_v28 = vpop.f32.mrb[14].mxu0 }
 0x23d   : > { %v5119_v54 = vadd.f32 %v4936_v28, %v4600_v16  ;;  %v3373_v58 = vpop.f32.mrb[15].mxu0 }
 0x23e   : > { %v5120_v18 = vadd.f32 %v3373_v58, %v1809_v24  ;;  %v4603_v9 = vpop.f32.mrb[16].mxu1 }
 0x23f   : > { %3686 = vst [vmem:[%s6740_s25 + $0xf0] sm:$0xff] %v5119_v54  ;;  %3750 = vst [vmem:[%s6740_s25 + $0xf8] sm:$0xff] %v5119_v54  ;;  %v1823_v31 = vpop.f32.mrb[17].mxu1 }
 0x240   : > { %3685 = vst [vmem:[%s6740_s25 + $0xe0] sm:$0xff] %v5120_v18  ;;  %3749 = vst [vmem:[%s6740_s25 + $0xe8] sm:$0xff] %v5120_v18  ;;  %v4939_v44 = vpop.f32.mrb[16].mxu0 }
 0x241   : > { %v5121_v30 = vadd.f32 %v4939_v44, %v4603_v9  ;;  %v3385_v51 = vpop.f32.mrb[17].mxu0 }
 0x242   : > { %v5122_v56 = vadd.f32 %v3385_v51, %v1823_v31  ;;  %v4606_v8 = vpop.f32.mrb[18].mxu1 }
 0x243   : > { %3688 = vst [vmem:[%s6740_s25 + $0x110] sm:$0xff] %v5121_v30  ;;  %3752 = vst [vmem:[%s6740_s25 + $0x118] sm:$0xff] %v5121_v30  ;;  %v1837_v53 = vpop.f32.mrb[19].mxu1 }
 0x244   : > { %3687 = vst [vmem:[%s6740_s25 + $0x100] sm:$0xff] %v5122_v56  ;;  %3751 = vst [vmem:[%s6740_s25 + $0x108] sm:$0xff] %v5122_v56  ;;  %v4942_v29 = vpop.f32.mrb[18].mxu0 }
 0x245   : > { %v5123_v12 = vadd.f32 %v4942_v29, %v4606_v8  ;;  %v3397_v45 = vpop.f32.mrb[19].mxu0 }
 0x246   : > { %v5124_v59 = vadd.f32 %v3397_v45, %v1837_v53  ;;  %v4609_v48 = vpop.f32.mrb[20].mxu1 }
 0x247   : > { %3690 = vst [vmem:[%s6740_s25 + $0x130] sm:$0xff] %v5123_v12  ;;  %3754 = vst [vmem:[%s6740_s25 + $0x138] sm:$0xff] %v5123_v12  ;;  %v1851_v20 = vpop.f32.mrb[21].mxu1 }
 0x248   : > { %3689 = vst [vmem:[%s6740_s25 + $0x120] sm:$0xff] %v5124_v59  ;;  %3753 = vst [vmem:[%s6740_s25 + $0x128] sm:$0xff] %v5124_v59  ;;  %v4945_v19 = vpop.f32.mrb[20].mxu0 }
 0x249   : > { %v5125_v25 = vadd.f32 %v4945_v19, %v4609_v48  ;;  %v3409_v23 = vpop.f32.mrb[21].mxu0 }
 0x24a   : > { %v5126_v27 = vadd.f32 %v3409_v23, %v1851_v20  ;;  %v4612_v38 = vpop.f32.mrb[22].mxu1 }
 0x24b   : > { %3692 = vst [vmem:[%s6740_s25 + $0x150] sm:$0xff] %v5125_v25  ;;  %3756 = vst [vmem:[%s6740_s25 + $0x158] sm:$0xff] %v5125_v25  ;;  %v1865_v50 = vpop.f32.mrb[23].mxu1 }
 0x24c   : > { %3691 = vst [vmem:[%s6740_s25 + $0x140] sm:$0xff] %v5126_v27  ;;  %3755 = vst [vmem:[%s6740_s25 + $0x148] sm:$0xff] %v5126_v27  ;;  %v4948_v40 = vpop.f32.mrb[22].mxu0 }
 0x24d   : > { %v5127_v41 = vadd.f32 %v4948_v40, %v4612_v38  ;;  %v3421_v14 = vpop.f32.mrb[23].mxu0 }
 0x24e   : > { %v5128_v37 = vadd.f32 %v3421_v14, %v1865_v50  ;;  %v4615_v39 = vpop.f32.mrb[24].mxu1 }
 0x24f   : > { %3694 = vst [vmem:[%s6740_s25 + $0x170] sm:$0xff] %v5127_v41  ;;  %3758 = vst [vmem:[%s6740_s25 + $0x178] sm:$0xff] %v5127_v41  ;;  %v1879_v0 = vpop.f32.mrb[25].mxu1 }
 0x250   : > { %3693 = vst [vmem:[%s6740_s25 + $0x160] sm:$0xff] %v5128_v37  ;;  %3757 = vst [vmem:[%s6740_s25 + $0x168] sm:$0xff] %v5128_v37  ;;  %v4951_v42 = vpop.f32.mrb[24].mxu0 }
 0x251   : > { %v5129_v61 = vadd.f32 %v4951_v42, %v4615_v39  ;;  %v3433_v32 = vpop.f32.mrb[25].mxu0 }
 0x252   : > { %v5130_v52 = vadd.f32 %v3433_v32, %v1879_v0  ;;  %v4618_v47 = vpop.f32.mrb[26].mxu1 }
 0x253   : > { %3696 = vst [vmem:[%s6740_s25 + $0x190] sm:$0xff] %v5129_v61  ;;  %3760 = vst [vmem:[%s6740_s25 + $0x198] sm:$0xff] %v5129_v61  ;;  %v1893_v10 = vpop.f32.mrb[27].mxu1 }
 0x254   : > { %3695 = vst [vmem:[%s6740_s25 + $0x180] sm:$0xff] %v5130_v52  ;;  %3759 = vst [vmem:[%s6740_s25 + $0x188] sm:$0xff] %v5130_v52  ;;  %v4954_v46 = vpop.f32.mrb[26].mxu0 }
 0x255   : > { %v5131_v4 = vadd.f32 %v4954_v46, %v4618_v47  ;;  %v3445_v60 = vpop.f32.mrb[27].mxu0 }
 0x256   : > { %v5132_v35 = vadd.f32 %v3445_v60, %v1893_v10  ;;  %v4621_v63 = vpop.f32.mrb[28].mxu1 }
 0x257   : > { %3698 = vst [vmem:[%s6740_s25 + $0x1b0] sm:$0xff] %v5131_v4  ;;  %3762 = vst [vmem:[%s6740_s25 + $0x1b8] sm:$0xff] %v5131_v4  ;;  %v1907_v17 = vpop.f32.mrb[29].mxu1 }
 0x258   : > { %3697 = vst [vmem:[%s6740_s25 + $0x1a0] sm:$0xff] %v5132_v35  ;;  %3761 = vst [vmem:[%s6740_s25 + $0x1a8] sm:$0xff] %v5132_v35  ;;  %v4957_v22 = vpop.f32.mrb[28].mxu0 }
 0x259   : > { %v5133_v2 = vadd.f32 %v4957_v22, %v4621_v63  ;;  %v3457_v15 = vpop.f32.mrb[29].mxu0 }
 0x25a   : > { %v5134_v21 = vadd.f32 %v3457_v15, %v1907_v17  ;;  %v4624_v26 = vpop.f32.mrb[30].mxu1 }
 0x25b   : > { %3700 = vst [vmem:[%s6740_s25 + $0x1d0] sm:$0xff] %v5133_v2  ;;  %3764 = vst [vmem:[%s6740_s25 + $0x1d8] sm:$0xff] %v5133_v2  ;;  %v1921_v33 = vpop.f32.mrb[31].mxu1 }
 0x25c   : > { %3699 = vst [vmem:[%s6740_s25 + $0x1c0] sm:$0xff] %v5134_v21  ;;  %3763 = vst [vmem:[%s6740_s25 + $0x1c8] sm:$0xff] %v5134_v21  ;;  %v4960_v43 = vpop.f32.mrb[30].mxu0 }
 0x25d   : > { %v5135_v11 = vadd.f32 %v4960_v43, %v4624_v26  ;;  %v3469_v55 = vpop.f32.mrb[31].mxu0 }
 0x25e   : > { %v5136_v3 = vadd.f32 %v3469_v55, %v1921_v33  ;;  %v4627_v49 = vpop.f32.mrb[32].mxu1 }
 0x25f   : > { %3702 = vst [vmem:[%s6740_s25 + $0x1f0] sm:$0xff] %v5135_v11  ;;  %3766 = vst [vmem:[%s6740_s25 + $0x1f8] sm:$0xff] %v5135_v11  ;;  %v1935_v6 = vpop.f32.mrb[33].mxu1 }
 0x260   : > { %3701 = vst [vmem:[%s6740_s25 + $0x1e0] sm:$0xff] %v5136_v3  ;;  %3765 = vst [vmem:[%s6740_s25 + $0x1e8] sm:$0xff] %v5136_v3  ;;  %v4963_v34 = vpop.f32.mrb[32].mxu0 }
 0x261   : > { %v5137_v1 = vadd.f32 %v4963_v34, %v4627_v49  ;;  %v3481_v13 = vpop.f32.mrb[33].mxu0 }
 0x262   : > { %v5138_v62 = vadd.f32 %v3481_v13, %v1935_v6  ;;  %v4630_v7 = vpop.f32.mrb[34].mxu1 }
 0x263   : > { %3704 = vst [vmem:[%s6740_s25 + $0x210] sm:$0xff] %v5137_v1  ;;  %3768 = vst [vmem:[%s6740_s25 + $0x218] sm:$0xff] %v5137_v1  ;;  %v1949_v36 = vpop.f32.mrb[35].mxu1 }
 0x264   : > { %3703 = vst [vmem:[%s6740_s25 + $0x200] sm:$0xff] %v5138_v62  ;;  %3767 = vst [vmem:[%s6740_s25 + $0x208] sm:$0xff] %v5138_v62  ;;  %v4966_v5 = vpop.f32.mrb[34].mxu0 }
 0x265   : > { %v5139_v57 = vadd.f32 %v4966_v5, %v4630_v7  ;;  %v3493_v16 = vpop.f32.mrb[35].mxu0 }
 0x266   : > { %v5140_v28 = vadd.f32 %v3493_v16, %v1949_v36  ;;  %v4633_v54 = vpop.f32.mrb[36].mxu1 }
 0x267   : > { %3706 = vst [vmem:[%s6740_s25 + $0x230] sm:$0xff] %v5139_v57  ;;  %3770 = vst [vmem:[%s6740_s25 + $0x238] sm:$0xff] %v5139_v57  ;;  %v1963_v18 = vpop.f32.mrb[37].mxu1 }
 0x268   : > { %3705 = vst [vmem:[%s6740_s25 + $0x220] sm:$0xff] %v5140_v28  ;;  %3769 = vst [vmem:[%s6740_s25 + $0x228] sm:$0xff] %v5140_v28  ;;  %v4969_v24 = vpop.f32.mrb[36].mxu0 }
 0x269   : > { %v5141_v58 = vadd.f32 %v4969_v24, %v4633_v54  ;;  %v3505_v9 = vpop.f32.mrb[37].mxu0 }
 0x26a   : > { %v5142_v44 = vadd.f32 %v3505_v9, %v1963_v18  ;;  %v4636_v30 = vpop.f32.mrb[38].mxu1 }
 0x26b   : > { %3708 = vst [vmem:[%s6740_s25 + $0x250] sm:$0xff] %v5141_v58  ;;  %3772 = vst [vmem:[%s6740_s25 + $0x258] sm:$0xff] %v5141_v58  ;;  %v1977_v56 = vpop.f32.mrb[39].mxu1 }
 0x26c   : > { %3707 = vst [vmem:[%s6740_s25 + $0x240] sm:$0xff] %v5142_v44  ;;  %3771 = vst [vmem:[%s6740_s25 + $0x248] sm:$0xff] %v5142_v44  ;;  %v4972_v31 = vpop.f32.mrb[38].mxu0 }
 0x26d   : > { %v5143_v51 = vadd.f32 %v4972_v31, %v4636_v30  ;;  %v3517_v8 = vpop.f32.mrb[39].mxu0 }
 0x26e   : > { %v5144_v29 = vadd.f32 %v3517_v8, %v1977_v56  ;;  %v4639_v12 = vpop.f32.mrb[40].mxu1 }
 0x26f   : > { %3710 = vst [vmem:[%s6740_s25 + $0x270] sm:$0xff] %v5143_v51  ;;  %3774 = vst [vmem:[%s6740_s25 + $0x278] sm:$0xff] %v5143_v51  ;;  %v1991_v59 = vpop.f32.mrb[41].mxu1 }
 0x270   : > { %3709 = vst [vmem:[%s6740_s25 + $0x260] sm:$0xff] %v5144_v29  ;;  %3773 = vst [vmem:[%s6740_s25 + $0x268] sm:$0xff] %v5144_v29  ;;  %v4975_v53 = vpop.f32.mrb[40].mxu0 }
 0x271   : > { %v5145_v45 = vadd.f32 %v4975_v53, %v4639_v12  ;;  %v3529_v48 = vpop.f32.mrb[41].mxu0 }
 0x272   : > { %v5146_v19 = vadd.f32 %v3529_v48, %v1991_v59  ;;  %v4642_v25 = vpop.f32.mrb[42].mxu1 }
 0x273   : > { %3712 = vst [vmem:[%s6740_s25 + $0x290] sm:$0xff] %v5145_v45  ;;  %3776 = vst [vmem:[%s6740_s25 + $0x298] sm:$0xff] %v5145_v45  ;;  %v2005_v27 = vpop.f32.mrb[43].mxu1 }
 0x274   : > { %3711 = vst [vmem:[%s6740_s25 + $0x280] sm:$0xff] %v5146_v19  ;;  %3775 = vst [vmem:[%s6740_s25 + $0x288] sm:$0xff] %v5146_v19  ;;  %v4978_v20 = vpop.f32.mrb[42].mxu0 }
 0x275   : > { %v5147_v23 = vadd.f32 %v4978_v20, %v4642_v25  ;;  %v3541_v38 = vpop.f32.mrb[43].mxu0 }
 0x276   : > { %v5148_v40 = vadd.f32 %v3541_v38, %v2005_v27  ;;  %v4645_v41 = vpop.f32.mrb[44].mxu1 }
 0x277   : > { %3714 = vst [vmem:[%s6740_s25 + $0x2b0] sm:$0xff] %v5147_v23  ;;  %3778 = vst [vmem:[%s6740_s25 + $0x2b8] sm:$0xff] %v5147_v23  ;;  %v2019_v37 = vpop.f32.mrb[45].mxu1 }
 0x278   : > { %3713 = vst [vmem:[%s6740_s25 + $0x2a0] sm:$0xff] %v5148_v40  ;;  %3777 = vst [vmem:[%s6740_s25 + $0x2a8] sm:$0xff] %v5148_v40  ;;  %v4981_v50 = vpop.f32.mrb[44].mxu0 }
 0x279   : > { %v5149_v14 = vadd.f32 %v4981_v50, %v4645_v41  ;;  %v3553_v39 = vpop.f32.mrb[45].mxu0 }
 0x27a   : > { %v5150_v42 = vadd.f32 %v3553_v39, %v2019_v37  ;;  %v4648_v61 = vpop.f32.mrb[46].mxu1 }
 0x27b   : > { %3716 = vst [vmem:[%s6740_s25 + $0x2d0] sm:$0xff] %v5149_v14  ;;  %3780 = vst [vmem:[%s6740_s25 + $0x2d8] sm:$0xff] %v5149_v14  ;;  %v2033_v52 = vpop.f32.mrb[47].mxu1 }
 0x27c   : > { %3715 = vst [vmem:[%s6740_s25 + $0x2c0] sm:$0xff] %v5150_v42  ;;  %3779 = vst [vmem:[%s6740_s25 + $0x2c8] sm:$0xff] %v5150_v42  ;;  %v4984_v0 = vpop.f32.mrb[46].mxu0 }
 0x27d   : > { %v5151_v32 = vadd.f32 %v4984_v0, %v4648_v61  ;;  %v3565_v47 = vpop.f32.mrb[47].mxu0 }
 0x27e   : > { %v5152_v46 = vadd.f32 %v3565_v47, %v2033_v52  ;;  %v4651_v4 = vpop.f32.mrb[48].mxu1 }
 0x27f   : > { %3718 = vst [vmem:[%s6740_s25 + $0x2f0] sm:$0xff] %v5151_v32  ;;  %3782 = vst [vmem:[%s6740_s25 + $0x2f8] sm:$0xff] %v5151_v32  ;;  %v2047_v35 = vpop.f32.mrb[49].mxu1 }
 0x280   : > { %3717 = vst [vmem:[%s6740_s25 + $0x2e0] sm:$0xff] %v5152_v46  ;;  %3781 = vst [vmem:[%s6740_s25 + $0x2e8] sm:$0xff] %v5152_v46  ;;  %v4987_v10 = vpop.f32.mrb[48].mxu0 }
 0x281   : > { %v5153_v60 = vadd.f32 %v4987_v10, %v4651_v4  ;;  %v3577_v63 = vpop.f32.mrb[49].mxu0 }
 0x282   : > { %v5154_v22 = vadd.f32 %v3577_v63, %v2047_v35  ;;  %v4654_v2 = vpop.f32.mrb[50].mxu1 }
 0x283   : > { %3720 = vst [vmem:[%s6740_s25 + $0x310] sm:$0xff] %v5153_v60  ;;  %3784 = vst [vmem:[%s6740_s25 + $0x318] sm:$0xff] %v5153_v60  ;;  %v2061_v21 = vpop.f32.mrb[51].mxu1 }
 0x284   : > { %3719 = vst [vmem:[%s6740_s25 + $0x300] sm:$0xff] %v5154_v22  ;;  %3783 = vst [vmem:[%s6740_s25 + $0x308] sm:$0xff] %v5154_v22  ;;  %v4990_v17 = vpop.f32.mrb[50].mxu0 }
 0x285   : > { %v5155_v15 = vadd.f32 %v4990_v17, %v4654_v2  ;;  %v3589_v26 = vpop.f32.mrb[51].mxu0 }
 0x286   : > { %v5156_v43 = vadd.f32 %v3589_v26, %v2061_v21  ;;  %v4657_v11 = vpop.f32.mrb[52].mxu1 }
 0x287   : > { %3722 = vst [vmem:[%s6740_s25 + $0x330] sm:$0xff] %v5155_v15  ;;  %3786 = vst [vmem:[%s6740_s25 + $0x338] sm:$0xff] %v5155_v15  ;;  %v2075_v3 = vpop.f32.mrb[53].mxu1 }
 0x288   : > { %3721 = vst [vmem:[%s6740_s25 + $0x320] sm:$0xff] %v5156_v43  ;;  %3785 = vst [vmem:[%s6740_s25 + $0x328] sm:$0xff] %v5156_v43  ;;  %v4993_v33 = vpop.f32.mrb[52].mxu0 }
 0x289   : > { %v5157_v55 = vadd.f32 %v4993_v33, %v4657_v11  ;;  %v3601_v49 = vpop.f32.mrb[53].mxu0 }
 0x28a   : > { %v5158_v34 = vadd.f32 %v3601_v49, %v2075_v3  ;;  %v4660_v1 = vpop.f32.mrb[54].mxu1 }
 0x28b   : > { %3724 = vst [vmem:[%s6740_s25 + $0x350] sm:$0xff] %v5157_v55  ;;  %3788 = vst [vmem:[%s6740_s25 + $0x358] sm:$0xff] %v5157_v55  ;;  %v2089_v62 = vpop.f32.mrb[55].mxu1 }
 0x28c   : > { %3723 = vst [vmem:[%s6740_s25 + $0x340] sm:$0xff] %v5158_v34  ;;  %3787 = vst [vmem:[%s6740_s25 + $0x348] sm:$0xff] %v5158_v34  ;;  %v4996_v6 = vpop.f32.mrb[54].mxu0 }
 0x28d   : > { %v5159_v13 = vadd.f32 %v4996_v6, %v4660_v1  ;;  %v3613_v7 = vpop.f32.mrb[55].mxu0 }
 0x28e   : > { %v5160_v5 = vadd.f32 %v3613_v7, %v2089_v62  ;;  %v4663_v57 = vpop.f32.mrb[56].mxu1 }
 0x28f   : > { %3726 = vst [vmem:[%s6740_s25 + $0x370] sm:$0xff] %v5159_v13  ;;  %3790 = vst [vmem:[%s6740_s25 + $0x378] sm:$0xff] %v5159_v13  ;;  %v2103_v28 = vpop.f32.mrb[57].mxu1 }
 0x290   : > { %3725 = vst [vmem:[%s6740_s25 + $0x360] sm:$0xff] %v5160_v5  ;;  %3789 = vst [vmem:[%s6740_s25 + $0x368] sm:$0xff] %v5160_v5  ;;  %v4999_v36 = vpop.f32.mrb[56].mxu0 }
 0x291   : > { %v5161_v16 = vadd.f32 %v4999_v36, %v4663_v57  ;;  %v3625_v54 = vpop.f32.mrb[57].mxu0 }
 0x292   : > { %v5162_v24 = vadd.f32 %v3625_v54, %v2103_v28  ;;  %v4666_v58 = vpop.f32.mrb[58].mxu1 }
 0x293   : > { %3728 = vst [vmem:[%s6740_s25 + $0x390] sm:$0xff] %v5161_v16  ;;  %3792 = vst [vmem:[%s6740_s25 + $0x398] sm:$0xff] %v5161_v16  ;;  %v2117_v44 = vpop.f32.mrb[59].mxu1 }
 0x294   : > { %3727 = vst [vmem:[%s6740_s25 + $0x380] sm:$0xff] %v5162_v24  ;;  %3791 = vst [vmem:[%s6740_s25 + $0x388] sm:$0xff] %v5162_v24  ;;  %v5002_v18 = vpop.f32.mrb[58].mxu0 }
 0x295   : > { %v5163_v9 = vadd.f32 %v5002_v18, %v4666_v58  ;;  %v3637_v30 = vpop.f32.mrb[59].mxu0 }
 0x296   : > { %v5164_v31 = vadd.f32 %v3637_v30, %v2117_v44  ;;  %v4669_v51 = vpop.f32.mrb[60].mxu1 }
 0x297   : > { %3730 = vst [vmem:[%s6740_s25 + $0x3b0] sm:$0xff] %v5163_v9  ;;  %3794 = vst [vmem:[%s6740_s25 + $0x3b8] sm:$0xff] %v5163_v9  ;;  %v2131_v29 = vpop.f32.mrb[61].mxu1 }
 0x298   : > { %3729 = vst [vmem:[%s6740_s25 + $0x3a0] sm:$0xff] %v5164_v31  ;;  %3793 = vst [vmem:[%s6740_s25 + $0x3a8] sm:$0xff] %v5164_v31  ;;  %v5005_v56 = vpop.f32.mrb[60].mxu0 }
 0x299   : > { %v5165_v8 = vadd.f32 %v5005_v56, %v4669_v51  ;;  %v3649_v12 = vpop.f32.mrb[61].mxu0 }
 0x29a   : > { %v5166_v53 = vadd.f32 %v3649_v12, %v2131_v29  ;;  %v4672_v45 = vpop.f32.mrb[62].mxu1 }
 0x29b   : > { %3732 = vst [vmem:[%s6740_s25 + $0x3d0] sm:$0xff] %v5165_v8  ;;  %3796 = vst [vmem:[%s6740_s25 + $0x3d8] sm:$0xff] %v5165_v8  ;;  %v2145_v19 = vpop.f32.mrb[63].mxu1 }
 0x29c   : > { %3731 = vst [vmem:[%s6740_s25 + $0x3c0] sm:$0xff] %v5166_v53  ;;  %3795 = vst [vmem:[%s6740_s25 + $0x3c8] sm:$0xff] %v5166_v53  ;;  %v5008_v59 = vpop.f32.mrb[62].mxu0 }
 0x29d   : > { %v5167_v48 = vadd.f32 %v5008_v59, %v4672_v45  ;;  %v3661_v25 = vpop.f32.mrb[63].mxu0 }
 0x29e   : > { %v5168_v20 = vadd.f32 %v3661_v25, %v2145_v19 }
 0x29f   : > { %3734 = vst [vmem:[%s6740_s25 + $0x3f0] sm:$0xff] %v5167_v48  ;;  %3798 = vst [vmem:[%s6740_s25 + $0x3f8] sm:$0xff] %v5167_v48 }
 0x2a0   : > { %3733 = vst [vmem:[%s6740_s25 + $0x3e0] sm:$0xff] %v5168_v20  ;;  %3797 = vst [vmem:[%s6740_s25 + $0x3e8] sm:$0xff] %v5168_v20 }
 0x2a1   : > { %5520 = shalt.err (!%p5517_p7)
}
 0x2a2   : > { %s5521_s7 = scalar_lea.hbm %s6871_s30, 16384  ;;  %s5525_s16 = scalar_lea.hbm %s6924_s2, 65536 }
 0x2a3   : > { %p5522_p8 = scmp.ne.s32.totalorder %s6871_s30, %s5521_s7  ;;  %p5526_p1 = scmp.lt.u32.totalorder %s6871_s30, %s6924_s2 }
 0x2a4   : > { %p5527_p0 = scmp.lt.u32.totalorder %s5525_s16, %s5521_s7  ;;  %p5529_p6 = scmp.lt.u32.totalorder %s5521_s7, %s6871_s30 }
 0x2a5   : > { %p5523_p11 = pnand %p5522_p8, %p7335_p9 }
 0x2a6   : > { %p5528_p5 = por %p5527_p0, %p5526_p1 }
 0x2a7   : > { %p5524_p13 = pneg %p5523_p11 }
 0x2a8   : > { %p5530_p10 = por %p5529_p6, %p5528_p5 }
 0x2aa   : > { %p5531_p12 = pnand %p5530_p10, %p5524_p13 }
 0x2ac   : > { %5534 = shalt.err (!%p5531_p12)
}
 0x2ad   : > { %s5579_s24 = smov 256   ;;  %s5580_s21 = smov 16  }
 0x2ae   : > { %5429 = dma.vmem_to_hbm [thread:$0]  (%p7335_p9), %s6873_s27, 16384, %s6871_s30, %s6881_s13, %s5579_s24, %s5579_s24, %s5580_s21  }
 0x2af PF: > { %p5441_p2 = scmp.ge.s32.totalorder %s5573_s12, 2  ;;  %s3829_s23 = sand.u32 1, %s5561_s9  }
 0x2b0   : > { %p7336_p3 = scmp.ne.s32.totalorder %s7079_s20, 0  ;;  %s3830_s25 = scalar_lea.sflag [#allocation4], %s3829_s23 }
 0x2b2   : > { %p5436_p4 = pnand %p5441_p2, %p7336_p3 }
 0x2b4   : > { %5556 = dma.done.wait (!%p5436_p4), %s3830_s25, 16384  }
 0x2b5   : > { %5558 = vsyncadd (!%p5436_p4), %s3830_s25, 4294950912  ;;  %p13_p7 = scmp.ge.s32.totalorder %s5621_s15, 6   ;;  %s7337_s9 = smov %s5565_s10 }
 0x2b6   : > { %s7338_s10 = smov %s5569_s11  ;;  %s7339_s11 = smov %s5632_s18 }
 0x2b7   : > { %s7340_s12 = smov %s5621_s15  ;;  %15 = sbr.rel (!%p13_p7) target bundleno = 4 (0x4), region = 68 }
 0x2be   :  { %3835 = vsyncpa [#allocation3], 1 }
 0x2bf   :  { %3837 = vsyncpa [#allocation3 + $0x1], 1 }
 0x2c0   :  { %3838 = vsyncpa [#allocation4], 1 }
 0x2c1   :  { %3840 = vsyncpa [#allocation4 + $0x1], 1 }

</bundles_post_ra>
